<compile_context>
chip_gen: v7x
topology: tpu7x:2x2x1
jax: 0.10.0
libtpu: 0.0.40
codegen_flags: <defaults>
</compile_context>

<pallas_src>
import numpy as np
import jax
import jax.numpy as jnp
from jax import lax
from jax.experimental import pallas as pl
from jax.experimental.pallas import tpu as pltpu

LEAKY_SLOPE = 0.01   # nn.LeakyReLU default
BN_EPS = 1e-5        # nn.BatchNorm1d default
LANE = 128


def _rup(x, m):
    return ((x + m - 1) // m) * m


def convT_as_matrix(w, l_in, stride):
    """ConvTranspose1d (no padding) as a dense (Cin*Lin, Cout*Lout) matrix."""
    c_in, c_out, k = w.shape
    l_out = (l_in - 1) * stride + k
    m = np.zeros((c_in * l_in, c_out * l_out), np.float32)
    for ci in range(c_in):
        for li in range(l_in):
            row = ci * l_in + li
            for co in range(c_out):
                start = co * l_out + li * stride
                m[row, start:start + k] += w[ci, co]
    return m, l_out


def build_generator(key, latent_dim=8, par_dim=1, hidden_channels=(8, 8, 8, 8, 2)):
    hc = list(hidden_channels)
    assert len(hc) == 5
    LAT, PAR = latent_dim, par_dim
    ks = jax.random.split(key, 16)

    def rnd(k, shape, scale=0.1):
        return np.asarray(scale * jax.random.normal(k, shape, jnp.float32))

    # ---- chain geometry ----------------------------------------------------
    conv_cfg = [(hc[0], hc[1], 5, 2, True),
                (hc[1], hc[2], 5, 2, True),
                (hc[2], hc[3], 5, 2, True),
                (hc[3], hc[4], 4, 2, False)]
    geoms = []
    l_in = 4
    w_real = [hc[0] * 4]
    for (cin, cout, k, s, hb) in conv_cfg:
        l_out = (l_in - 1) * s + k
        geoms.append((cin, l_in, cout, l_out, k, s, hb))
        w_real.append(cout * l_out)
        l_in = l_out
    Wp = tuple(_rup(w, LANE) for w in w_real)          # padded activation widths
    CP = _rup(max(g[0] for g in geoms), 8)             # padded BN channel count

    # ---- raw parameters (also used by the numpy reference) ------------------
    conv_mats, conv_bias = [], []
    for i, (cin, li, cout, lo, k, s, hb) in enumerate(geoms):
        w = rnd(ks[1 + i], (cin, cout, k))              # PyTorch layout (Cin,Cout,K)
        m, _ = convT_as_matrix(w, li, s)
        conv_mats.append(m)
        conv_bias.append(rnd(ks[11 + i], (cout,)) if hb else None)

    gks = jax.random.split(ks[14], 8)
    raw = dict(
        Win=rnd(ks[5], (2 * LAT, hc[0] * 4)),
        bin=rnd(ks[10], (hc[0] * 4,)),
        W2=rnd(ks[6], (LAT, LAT)),
        W1=rnd(ks[7], (PAR, LAT)),
        b1=rnd(ks[8], (LAT,)),
        b2=rnd(ks[9], (LAT,)),
        gamma=[1.0 + rnd(gks[i], (geoms[i][0],)) for i in range(4)],
        beta=[rnd(gks[4 + i], (geoms[i][0],)) for i in range(4)],
        conv_mats=conv_mats,
        conv_bias=conv_bias,
        geoms=geoms,
    )

    # ---- M slabs (bf16), row-tight per stage --------------------------------
    m12_rows = max(Wp[0], Wp[1])
    M12 = np.zeros((m12_rows, Wp[1] + Wp[2]), np.float32)
    M12[:w_real[0], :w_real[1]] = conv_mats[0]
    M12[:w_real[1], Wp[1]:Wp[1] + w_real[2]] = conv_mats[1]
    M3 = np.zeros((Wp[2], Wp[3]), np.float32)
    M3[:w_real[2], :w_real[3]] = conv_mats[2]
    M4 = np.zeros((Wp[3], Wp[4]), np.float32)
    M4[:w_real[3], :w_real[4]] = conv_mats[3]

    # ---- PT slab (bf16, exact 0/1): BN channel <-> column map ---------------
    prow, off = [], 0
    for i in range(4):
        prow.append(off)
        off += Wp[i]
    PT = np.zeros((CP, off), np.float32)
    for i, (cin, li, *_r) in enumerate(geoms):
        for c in range(cin):
            PT[c, prow[i] + c * li: prow[i] + (c + 1) * li] = 1.0

    # ---- V slab (f32): small weights / biases / BN affine, rows packed tight
    VR, r = {}, 0
    VR["w_in"] = r; r += 2 * LAT
    VR["w2"] = r; r += LAT
    VR["w1"] = r; r += PAR
    for nm in ("b1", "b2", "bin", "cb1", "cb2", "cb3",
               "g1", "g2", "g3", "g4", "be1", "be2", "be3", "be4"):
        VR[nm] = r; r += 1
    VW = max(Wp[0], Wp[1], Wp[2], Wp[3], LAT, CP)
    V = np.zeros((r, VW), np.float32)
    V[VR["w_in"]:VR["w_in"] + 2 * LAT, :hc[0] * 4] = raw["Win"]
    V[VR["w2"]:VR["w2"] + LAT, :LAT] = raw["W2"]
    V[VR["w1"]:VR["w1"] + PAR, :LAT] = raw["W1"]
    V[VR["b1"], :LAT] = raw["b1"]
    V[VR["b2"], :LAT] = raw["b2"]
    V[VR["bin"], :hc[0] * 4] = raw["bin"]
    for i in range(3):
        cout, lo = geoms[i][2], geoms[i][3]
        V[VR[f"cb{i + 1}"], :cout * lo] = np.repeat(conv_bias[i], lo)
    for i, (cin, *_r2) in enumerate(geoms):
        V[VR[f"g{i + 1}"], :cin] = raw["gamma"][i]
        V[VR[f"be{i + 1}"], :cin] = raw["beta"][i]

    params = dict(M12=jnp.asarray(M12, jnp.bfloat16),
                  M3=jnp.asarray(M3, jnp.bfloat16),
                  M4=jnp.asarray(M4, jnp.bfloat16),
                  PT=jnp.asarray(PT, jnp.bfloat16),
                  V=jnp.asarray(V, jnp.float32))
    meta = dict(lat=LAT, par=PAR, cp=CP, wp=Wp,
                bn_len=tuple(g[1] for g in geoms),
                prow=tuple(prow), vrow=VR,
                c_out=hc[4], l_out=geoms[-1][3])
    return params, meta, raw


def make_forward(meta):
    LAT, PAR, CP = meta["lat"], meta["par"], meta["cp"]
    Wp, Ls = meta["wp"], meta["bn_len"]
    prow, VR = meta["prow"], meta["vrow"]
    c_out, l_out = meta["c_out"], meta["l_out"]
    f32, bf16 = jnp.float32, jnp.bfloat16
    NT = (((1,), (1,)), ((), ()))   # contract last dims of both operands (A @ B.T)
    NN = (((1,), (0,)), ((), ()))   # plain matmul

    def forward(x, pars, M12, M3, M4, PT, V):
        B = x.shape[0]

        def kernel(xp_ref, m12_ref, m3_ref, m4_ref, pt_ref, v_ref, o_ref):
            def vrow(name, width):                     # (1, width) parameter row
                r = VR[name]
                return v_ref[r:r + 1, :width]

            def leaky(t):
                return jnp.maximum(t, LEAKY_SLOPE * t)

            def mm_exact(a_f32, b_bf16, dims):
                # f32 operand x exact-bf16 operand via hi/lo split: two
                # independent MXU pushes, ~f32-accurate result, f32 accumulate.
                hi = a_f32.astype(bf16)
                lo = (a_f32 - hi.astype(f32)).astype(bf16)
                y = lax.dot_general(hi, b_bf16, dims, preferred_element_type=f32)
                return y + lax.dot_general(lo, b_bf16, dims,
                                           preferred_element_type=f32)

            def batch_norm(h, idx):
                w = Wp[idx]
                inv_n = 1.0 / float(B * Ls[idx])
                pt_i = pt_ref[:, prow[idx]:prow[idx] + w]              # (CP, w) 0/1
                # batch axis pre-reduced on the VPU (exact f32 sums)
                s1 = jnp.sum(h, axis=0, keepdims=True)                 # (1, w)
                s2 = jnp.sum(h * h, axis=0, keepdims=True)             # (1, w)
                st = mm_exact(jnp.concatenate([s1, s2], axis=0), pt_i, NT)  # (2, CP)
                mean = st[0:1] * inv_n
                var = jnp.maximum(st[1:2] * inv_n - mean * mean, 0.0)  # clamp >= 0
                inv = lax.rsqrt(var + BN_EPS)
                scale = vrow(f"g{idx + 1}", CP) * inv
                shift = vrow(f"be{idx + 1}", CP) - mean * scale
                # merged broadcast-back: one [scale; shift] operand
                ss = mm_exact(jnp.concatenate([scale, shift], axis=0), pt_i, NN)
                return h * ss[0:1] + ss[1:2]

            def convt(h, m_block, bias_name, w_out):
                y = jnp.dot(h.astype(bf16), m_block, preferred_element_type=f32)
                if bias_name is not None:
                    y = y + vrow(bias_name, w_out)
                return y

            xp = xp_ref[...]                                           # (B, 128)

            # ---- conditioning branch, entirely on the VPU -------------------
            p = vrow("b1", LAT)
            for j in range(PAR):                       # par_layer1
                p = p + xp[:, LAT + j:LAT + j + 1] * \
                    v_ref[VR["w1"] + j:VR["w1"] + j + 1, :LAT]
            p = leaky(p)
            q = vrow("b2", LAT)
            for j in range(LAT):                       # par_layer2 (no MXU)
                q = q + p[:, j:j + 1] * \
                    v_ref[VR["w2"] + j:VR["w2"] + j + 1, :LAT]

            # ---- cat((x, pars_emb)) @ W_in == x @ W_in[:LAT] + q @ W_in[LAT:]
            h = jnp.dot(xp[:, :LAT], v_ref[VR["w_in"]:VR["w_in"] + LAT, :Wp[0]],
                        preferred_element_type=f32)
            h = h + jnp.dot(q, v_ref[VR["w_in"] + LAT:VR["w_in"] + 2 * LAT, :Wp[0]],
                            preferred_element_type=f32)
            h = leaky(h + vrow("bin", Wp[0]))

            # ---- (BN -> ConvT -> LeakyReLU) x3, then BN -> ConvT -> sigmoid -
            h = leaky(convt(batch_norm(h, 0),
                            m12_ref[0:Wp[0], 0:Wp[1]], "cb1", Wp[1]))
            h = leaky(convt(batch_norm(h, 1),
                            m12_ref[0:Wp[1], Wp[1]:Wp[1] + Wp[2]], "cb2", Wp[2]))
            h = leaky(convt(batch_norm(h, 2), m3_ref[...], "cb3", Wp[3]))
            h = convt(batch_norm(h, 3), m4_ref[...], None, Wp[4])
            o_ref[...] = 0.5 * (1.0 + jnp.tanh(0.5 * h))   # sigmoid, EUP only

        vspec = pl.BlockSpec(memory_space=pltpu.MemorySpace.VMEM)

        # pack x and pars into a single lane-padded input (one DMA)
        xp = jnp.zeros((B, LANE), f32)
        xp = xp.at[:, :LAT].set(x.astype(f32))
        xp = xp.at[:, LAT:LAT + PAR].set(pars.astype(f32))

        out = pl.pallas_call(
            kernel,
            out_shape=jax.ShapeDtypeStruct((B, Wp[4]), f32),
            in_specs=[vspec] * 6,
            out_specs=vspec,
        )(xp, M12, M3, M4, PT, V)
        # slice off lane padding, back to PyTorch NCL layout
        return out[:, :c_out * l_out].reshape(B, c_out, l_out)

    return forward


def reference_forward(x, pars, raw):
    """Pure numpy f32 reference with identical parameters/layout."""
    def leaky(t):
        return np.maximum(t, LEAKY_SLOPE * t)

    B = x.shape[0]
    p = pars @ raw["W1"] + raw["b1"]
    p = leaky(p)
    p = p @ raw["W2"] + raw["b2"]
    h = np.concatenate([x, p], axis=1) @ raw["Win"] + raw["bin"]
    h = leaky(h)
    for i, (cin, li, cout, lo, k, s, hb) in enumerate(raw["geoms"]):
        hc = h.reshape(B, cin, li)
        mean = hc.mean(axis=(0, 2), keepdims=True)
        var = hc.var(axis=(0, 2), keepdims=True)          # biased, training-mode BN
        hc = (hc - mean) / np.sqrt(var + BN_EPS)
        hc = hc * raw["gamma"][i][None, :, None] + raw["beta"][i][None, :, None]
        h = hc.reshape(B, cin * li) @ raw["conv_mats"][i]
        if raw["conv_bias"][i] is not None:
            h = h + np.repeat(raw["conv_bias"][i], lo)
        if i < 3:
            h = leaky(h)
    out = 1.0 / (1.0 + np.exp(-h))
    cout, lo = raw["geoms"][-1][2], raw["geoms"][-1][3]
    return out.reshape(B, cout, lo).astype(np.float32)


if __name__ == "__main__":
    key = jax.random.PRNGKey(0)
    kx, kp, kw = jax.random.split(key, 3)
    B, latent_dim, par_dim = 8, 8, 1
    hidden_channels = (8, 8, 8, 8, 2)   # module requires 5 entries
    params, meta, raw = build_generator(kw, latent_dim, par_dim, hidden_channels)
    x = jax.random.normal(kx, (B, latent_dim), jnp.float32)
    pars = jax.random.normal(kp, (B, par_dim), jnp.float32)

    fwd = jax.jit(make_forward(meta))
    out = fwd(x, pars, params["M12"], params["M3"], params["M4"],
              params["PT"], params["V"])
    out = jax.block_until_ready(out)

    # expected output length chain: 4 -> 11 -> 25 -> 53 -> 108
    assert out.shape == (B, hidden_channels[4], 108), out.shape
    assert bool(jnp.all(jnp.isfinite(out)))
    assert bool(jnp.all((out >= 0.0) & (out <= 1.0)))   # sigmoid range

    ref = reference_forward(np.asarray(x), np.asarray(pars), raw)
    err = float(np.max(np.abs(np.asarray(out) - ref)))
    assert err < 5e-2, f"max abs err vs f32 reference: {err}"
    print("KERNEL_OK")
</pallas_src>

<mosaic_0001>
module attributes {stable_mosaic.version = 11 : i64} {
  func.func @kernel(%arg0: memref<8x128xf32, #tpu.memory_space<vmem>>, %arg1: memref<128x384xbf16, #tpu.memory_space<vmem>>, %arg2: memref<256x512xbf16, #tpu.memory_space<vmem>>, %arg3: memref<512x256xbf16, #tpu.memory_space<vmem>>, %arg4: memref<8x1024xbf16, #tpu.memory_space<vmem>>, %arg5: memref<39x512xf32, #tpu.memory_space<vmem>>, %arg6: memref<8x256xf32, #tpu.memory_space<vmem>>) attributes {dimension_semantics = [], scalar_prefetch = 0 : i64, scratch_operands = 0 : i64, tpu.core_type = #tpu.core_type<tc>} {
    %c0 = arith.constant 0 : index
    %c0_0 = arith.constant 0 : index
    %0 = vector.load %arg0[%c0, %c0_0] : memref<8x128xf32, #tpu.memory_space<vmem>>, vector<8x128xf32>
    %c25 = arith.constant 25 : index
    %c0_1 = arith.constant 0 : index
    %1 = vector.load %arg5[%c25, %c0_1] : memref<39x512xf32, #tpu.memory_space<vmem>>, vector<1x8xf32>
    %2 = vector.extract_strided_slice %0 {offsets = [0, 8], sizes = [8, 1], strides = [1, 1]} : vector<8x128xf32> to vector<8x1xf32>
    %c24 = arith.constant 24 : index
    %c0_2 = arith.constant 0 : index
    %3 = vector.load %arg5[%c24, %c0_2] : memref<39x512xf32, #tpu.memory_space<vmem>>, vector<1x8xf32>
    %4 = vector.broadcast %2 : vector<8x1xf32> to vector<8x8xf32>
    %5 = vector.broadcast %3 : vector<1x8xf32> to vector<8x8xf32>
    %6 = arith.mulf %4, %5 : vector<8x8xf32>
    %7 = vector.broadcast %1 : vector<1x8xf32> to vector<8x8xf32>
    %8 = arith.addf %7, %6 : vector<8x8xf32>
    %cst = arith.constant 0.00999999977 : f32
    %9 = vector.broadcast %cst : f32 to vector<8x8xf32>
    %10 = arith.mulf %9, %8 : vector<8x8xf32>
    %11 = arith.maximumf %8, %10 : vector<8x8xf32>
    %c26 = arith.constant 26 : index
    %c0_3 = arith.constant 0 : index
    %12 = vector.load %arg5[%c26, %c0_3] : memref<39x512xf32, #tpu.memory_space<vmem>>, vector<1x8xf32>
    %13 = vector.extract_strided_slice %11 {offsets = [0, 0], sizes = [8, 1], strides = [1, 1]} : vector<8x8xf32> to vector<8x1xf32>
    %c16 = arith.constant 16 : index
    %c0_4 = arith.constant 0 : index
    %14 = vector.load %arg5[%c16, %c0_4] : memref<39x512xf32, #tpu.memory_space<vmem>>, vector<1x8xf32>
    %15 = vector.broadcast %13 : vector<8x1xf32> to vector<8x8xf32>
    %16 = vector.broadcast %14 : vector<1x8xf32> to vector<8x8xf32>
    %17 = arith.mulf %15, %16 : vector<8x8xf32>
    %18 = vector.broadcast %12 : vector<1x8xf32> to vector<8x8xf32>
    %19 = arith.addf %18, %17 : vector<8x8xf32>
    %20 = vector.extract_strided_slice %11 {offsets = [0, 1], sizes = [8, 1], strides = [1, 1]} : vector<8x8xf32> to vector<8x1xf32>
    %c17 = arith.constant 17 : index
    %c0_5 = arith.constant 0 : index
    %21 = vector.load %arg5[%c17, %c0_5] : memref<39x512xf32, #tpu.memory_space<vmem>>, vector<1x8xf32>
    %22 = vector.broadcast %20 : vector<8x1xf32> to vector<8x8xf32>
    %23 = vector.broadcast %21 : vector<1x8xf32> to vector<8x8xf32>
    %24 = arith.mulf %22, %23 : vector<8x8xf32>
    %25 = arith.addf %19, %24 : vector<8x8xf32>
    %26 = vector.extract_strided_slice %11 {offsets = [0, 2], sizes = [8, 1], strides = [1, 1]} : vector<8x8xf32> to vector<8x1xf32>
    %c18 = arith.constant 18 : index
    %c0_6 = arith.constant 0 : index
    %27 = vector.load %arg5[%c18, %c0_6] : memref<39x512xf32, #tpu.memory_space<vmem>>, vector<1x8xf32>
    %28 = vector.broadcast %26 : vector<8x1xf32> to vector<8x8xf32>
    %29 = vector.broadcast %27 : vector<1x8xf32> to vector<8x8xf32>
    %30 = arith.mulf %28, %29 : vector<8x8xf32>
    %31 = arith.addf %25, %30 : vector<8x8xf32>
    %32 = vector.extract_strided_slice %11 {offsets = [0, 3], sizes = [8, 1], strides = [1, 1]} : vector<8x8xf32> to vector<8x1xf32>
    %c19 = arith.constant 19 : index
    %c0_7 = arith.constant 0 : index
    %33 = vector.load %arg5[%c19, %c0_7] : memref<39x512xf32, #tpu.memory_space<vmem>>, vector<1x8xf32>
    %34 = vector.broadcast %32 : vector<8x1xf32> to vector<8x8xf32>
    %35 = vector.broadcast %33 : vector<1x8xf32> to vector<8x8xf32>
    %36 = arith.mulf %34, %35 : vector<8x8xf32>
    %37 = arith.addf %31, %36 : vector<8x8xf32>
    %38 = vector.extract_strided_slice %11 {offsets = [0, 4], sizes = [8, 1], strides = [1, 1]} : vector<8x8xf32> to vector<8x1xf32>
    %c20 = arith.constant 20 : index
    %c0_8 = arith.constant 0 : index
    %39 = vector.load %arg5[%c20, %c0_8] : memref<39x512xf32, #tpu.memory_space<vmem>>, vector<1x8xf32>
    %40 = vector.broadcast %38 : vector<8x1xf32> to vector<8x8xf32>
    %41 = vector.broadcast %39 : vector<1x8xf32> to vector<8x8xf32>
    %42 = arith.mulf %40, %41 : vector<8x8xf32>
    %43 = arith.addf %37, %42 : vector<8x8xf32>
    %44 = vector.extract_strided_slice %11 {offsets = [0, 5], sizes = [8, 1], strides = [1, 1]} : vector<8x8xf32> to vector<8x1xf32>
    %c21 = arith.constant 21 : index
    %c0_9 = arith.constant 0 : index
    %45 = vector.load %arg5[%c21, %c0_9] : memref<39x512xf32, #tpu.memory_space<vmem>>, vector<1x8xf32>
    %46 = vector.broadcast %44 : vector<8x1xf32> to vector<8x8xf32>
    %47 = vector.broadcast %45 : vector<1x8xf32> to vector<8x8xf32>
    %48 = arith.mulf %46, %47 : vector<8x8xf32>
    %49 = arith.addf %43, %48 : vector<8x8xf32>
    %50 = vector.extract_strided_slice %11 {offsets = [0, 6], sizes = [8, 1], strides = [1, 1]} : vector<8x8xf32> to vector<8x1xf32>
    %c22 = arith.constant 22 : index
    %c0_10 = arith.constant 0 : index
    %51 = vector.load %arg5[%c22, %c0_10] : memref<39x512xf32, #tpu.memory_space<vmem>>, vector<1x8xf32>
    %52 = vector.broadcast %50 : vector<8x1xf32> to vector<8x8xf32>
    %53 = vector.broadcast %51 : vector<1x8xf32> to vector<8x8xf32>
    %54 = arith.mulf %52, %53 : vector<8x8xf32>
    %55 = arith.addf %49, %54 : vector<8x8xf32>
    %56 = vector.extract_strided_slice %11 {offsets = [0, 7], sizes = [8, 1], strides = [1, 1]} : vector<8x8xf32> to vector<8x1xf32>
    %c23 = arith.constant 23 : index
    %c0_11 = arith.constant 0 : index
    %57 = vector.load %arg5[%c23, %c0_11] : memref<39x512xf32, #tpu.memory_space<vmem>>, vector<1x8xf32>
    %58 = vector.broadcast %56 : vector<8x1xf32> to vector<8x8xf32>
    %59 = vector.broadcast %57 : vector<1x8xf32> to vector<8x8xf32>
    %60 = arith.mulf %58, %59 : vector<8x8xf32>
    %61 = arith.addf %55, %60 : vector<8x8xf32>
    %62 = vector.extract_strided_slice %0 {offsets = [0, 0], sizes = [8, 8], strides = [1, 1]} : vector<8x128xf32> to vector<8x8xf32>
    %c0_12 = arith.constant 0 : index
    %c0_13 = arith.constant 0 : index
    %63 = vector.load %arg5[%c0_12, %c0_13] : memref<39x512xf32, #tpu.memory_space<vmem>>, vector<8x128xf32>
    %cst_14 = arith.constant dense<0.000000e+00> : vector<8x128xf32>
    %64 = tpu.matmul %62, %63, %cst_14 {dimension_numbers = #tpu.dot_dimension_numbers<[1], [0], [0], [1], [0, 0, 1, 1], [], []>} : vector<8x8xf32>, vector<8x128xf32>, vector<8x128xf32> -> vector<8x128xf32>
    %c8 = arith.constant 8 : index
    %c0_15 = arith.constant 0 : index
    %65 = vector.load %arg5[%c8, %c0_15] : memref<39x512xf32, #tpu.memory_space<vmem>>, vector<8x128xf32>
    %cst_16 = arith.constant dense<0.000000e+00> : vector<8x128xf32>
    %66 = tpu.matmul %61, %65, %cst_16 {dimension_numbers = #tpu.dot_dimension_numbers<[1], [0], [0], [1], [0, 0, 1, 1], [], []>} : vector<8x8xf32>, vector<8x128xf32>, vector<8x128xf32> -> vector<8x128xf32>
    %67 = arith.addf %64, %66 : vector<8x128xf32>
    %c27 = arith.constant 27 : index
    %c0_17 = arith.constant 0 : index
    %68 = vector.load %arg5[%c27, %c0_17] : memref<39x512xf32, #tpu.memory_space<vmem>>, vector<1x128xf32>
    %69 = vector.broadcast %68 : vector<1x128xf32> to vector<8x128xf32>
    %70 = arith.addf %67, %69 : vector<8x128xf32>
    %cst_18 = arith.constant 0.00999999977 : f32
    %71 = vector.broadcast %cst_18 : f32 to vector<8x128xf32>
    %72 = arith.mulf %71, %70 : vector<8x128xf32>
    %73 = arith.maximumf %70, %72 : vector<8x128xf32>
    %c0_19 = arith.constant 0 : index
    %c0_20 = arith.constant 0 : index
    %74 = vector.load %arg4[%c0_19, %c0_20] : memref<8x1024xbf16, #tpu.memory_space<vmem>>, vector<8x128xbf16>
    %cst_21 = arith.constant dense<0.000000e+00> : vector<128xf32>
    %75 = vector.multi_reduction <add>, %73, %cst_21 [0] : vector<8x128xf32> to vector<128xf32>
    %76 = vector.shape_cast %75 : vector<128xf32> to vector<1x128xf32>
    %77 = arith.mulf %73, %73 : vector<8x128xf32>
    %cst_22 = arith.constant dense<0.000000e+00> : vector<128xf32>
    %78 = vector.multi_reduction <add>, %77, %cst_22 [0] : vector<8x128xf32> to vector<128xf32>
    %79 = vector.shape_cast %78 : vector<128xf32> to vector<1x128xf32>
    %80 = tpu.concatenate %76, %79 in 0 : vector<1x128xf32>, vector<1x128xf32> -> vector<2x128xf32>
    %81 = arith.truncf %80 : vector<2x128xf32> to vector<2x128xbf16>
    %82 = arith.extf %81 : vector<2x128xbf16> to vector<2x128xf32>
    %83 = arith.subf %80, %82 : vector<2x128xf32>
    %84 = arith.truncf %83 : vector<2x128xf32> to vector<2x128xbf16>
    %cst_23 = arith.constant dense<0.000000e+00> : vector<2x8xf32>
    %85 = tpu.matmul %81, %74, %cst_23 {dimension_numbers = #tpu.dot_dimension_numbers<[1], [1], [0], [0], [0, 0, 1, 0], [], []>} : vector<2x128xbf16>, vector<8x128xbf16>, vector<2x8xf32> -> vector<2x8xf32>
    %cst_24 = arith.constant dense<0.000000e+00> : vector<2x8xf32>
    %86 = tpu.matmul %84, %74, %cst_24 {dimension_numbers = #tpu.dot_dimension_numbers<[1], [1], [0], [0], [0, 0, 1, 0], [], []>} : vector<2x128xbf16>, vector<8x128xbf16>, vector<2x8xf32> -> vector<2x8xf32>
    %87 = arith.addf %85, %86 : vector<2x8xf32>
    %88 = vector.extract_strided_slice %87 {offsets = [0, 0], sizes = [1, 8], strides = [1, 1]} : vector<2x8xf32> to vector<1x8xf32>
    %cst_25 = arith.constant 3.125000e-02 : f32
    %89 = vector.broadcast %cst_25 : f32 to vector<1x8xf32>
    %90 = arith.mulf %88, %89 : vector<1x8xf32>
    %91 = vector.extract_strided_slice %87 {offsets = [1, 0], sizes = [1, 8], strides = [1, 1]} : vector<2x8xf32> to vector<1x8xf32>
    %cst_26 = arith.constant 3.125000e-02 : f32
    %92 = vector.broadcast %cst_26 : f32 to vector<1x8xf32>
    %93 = arith.mulf %91, %92 : vector<1x8xf32>
    %94 = arith.mulf %90, %90 : vector<1x8xf32>
    %95 = arith.subf %93, %94 : vector<1x8xf32>
    %cst_27 = arith.constant 0.000000e+00 : f32
    %96 = vector.broadcast %cst_27 : f32 to vector<1x8xf32>
    %97 = arith.maximumf %95, %96 : vector<1x8xf32>
    %cst_28 = arith.constant 9.99999974E-6 : f32
    %98 = vector.broadcast %cst_28 : f32 to vector<1x8xf32>
    %99 = arith.addf %97, %98 : vector<1x8xf32>
    %100 = math.rsqrt %99 : vector<1x8xf32>
    %c31 = arith.constant 31 : index
    %c0_29 = arith.constant 0 : index
    %101 = vector.load %arg5[%c31, %c0_29] : memref<39x512xf32, #tpu.memory_space<vmem>>, vector<1x8xf32>
    %102 = arith.mulf %101, %100 : vector<1x8xf32>
    %c35 = arith.constant 35 : index
    %c0_30 = arith.constant 0 : index
    %103 = vector.load %arg5[%c35, %c0_30] : memref<39x512xf32, #tpu.memory_space<vmem>>, vector<1x8xf32>
    %104 = arith.mulf %90, %102 : vector<1x8xf32>
    %105 = arith.subf %103, %104 : vector<1x8xf32>
    %106 = tpu.concatenate %102, %105 in 0 : vector<1x8xf32>, vector<1x8xf32> -> vector<2x8xf32>
    %107 = arith.truncf %106 : vector<2x8xf32> to vector<2x8xbf16>
    %108 = arith.extf %107 : vector<2x8xbf16> to vector<2x8xf32>
    %109 = arith.subf %106, %108 : vector<2x8xf32>
    %110 = arith.truncf %109 : vector<2x8xf32> to vector<2x8xbf16>
    %cst_31 = arith.constant dense<0.000000e+00> : vector<2x128xf32>
    %111 = tpu.matmul %107, %74, %cst_31 {dimension_numbers = #tpu.dot_dimension_numbers<[1], [0], [0], [1], [0, 0, 1, 1], [], []>} : vector<2x8xbf16>, vector<8x128xbf16>, vector<2x128xf32> -> vector<2x128xf32>
    %cst_32 = arith.constant dense<0.000000e+00> : vector<2x128xf32>
    %112 = tpu.matmul %110, %74, %cst_32 {dimension_numbers = #tpu.dot_dimension_numbers<[1], [0], [0], [1], [0, 0, 1, 1], [], []>} : vector<2x8xbf16>, vector<8x128xbf16>, vector<2x128xf32> -> vector<2x128xf32>
    %113 = arith.addf %111, %112 : vector<2x128xf32>
    %114 = vector.extract_strided_slice %113 {offsets = [0, 0], sizes = [1, 128], strides = [1, 1]} : vector<2x128xf32> to vector<1x128xf32>
    %115 = vector.broadcast %114 : vector<1x128xf32> to vector<8x128xf32>
    %116 = arith.mulf %73, %115 : vector<8x128xf32>
    %117 = vector.extract_strided_slice %113 {offsets = [1, 0], sizes = [1, 128], strides = [1, 1]} : vector<2x128xf32> to vector<1x128xf32>
    %118 = vector.broadcast %117 : vector<1x128xf32> to vector<8x128xf32>
    %119 = arith.addf %116, %118 : vector<8x128xf32>
    %c0_33 = arith.constant 0 : index
    %c0_34 = arith.constant 0 : index
    %120 = vector.load %arg1[%c0_33, %c0_34] : memref<128x384xbf16, #tpu.memory_space<vmem>>, vector<128x128xbf16>
    %121 = arith.truncf %119 : vector<8x128xf32> to vector<8x128xbf16>
    %cst_35 = arith.constant dense<0.000000e+00> : vector<8x128xf32>
    %122 = tpu.matmul %121, %120, %cst_35 {dimension_numbers = #tpu.dot_dimension_numbers<[1], [0], [0], [1], [0, 0, 1, 1], [], []>} : vector<8x128xbf16>, vector<128x128xbf16>, vector<8x128xf32> -> vector<8x128xf32>
    %c28 = arith.constant 28 : index
    %c0_36 = arith.constant 0 : index
    %123 = vector.load %arg5[%c28, %c0_36] : memref<39x512xf32, #tpu.memory_space<vmem>>, vector<1x128xf32>
    %124 = vector.broadcast %123 : vector<1x128xf32> to vector<8x128xf32>
    %125 = arith.addf %122, %124 : vector<8x128xf32>
    %cst_37 = arith.constant 0.00999999977 : f32
    %126 = vector.broadcast %cst_37 : f32 to vector<8x128xf32>
    %127 = arith.mulf %126, %125 : vector<8x128xf32>
    %128 = arith.maximumf %125, %127 : vector<8x128xf32>
    %c0_38 = arith.constant 0 : index
    %c128 = arith.constant 128 : index
    %129 = vector.load %arg4[%c0_38, %c128] : memref<8x1024xbf16, #tpu.memory_space<vmem>>, vector<8x128xbf16>
    %cst_39 = arith.constant dense<0.000000e+00> : vector<128xf32>
    %130 = vector.multi_reduction <add>, %128, %cst_39 [0] : vector<8x128xf32> to vector<128xf32>
    %131 = vector.shape_cast %130 : vector<128xf32> to vector<1x128xf32>
    %132 = arith.mulf %128, %128 : vector<8x128xf32>
    %cst_40 = arith.constant dense<0.000000e+00> : vector<128xf32>
    %133 = vector.multi_reduction <add>, %132, %cst_40 [0] : vector<8x128xf32> to vector<128xf32>
    %134 = vector.shape_cast %133 : vector<128xf32> to vector<1x128xf32>
    %135 = tpu.concatenate %131, %134 in 0 : vector<1x128xf32>, vector<1x128xf32> -> vector<2x128xf32>
    %136 = arith.truncf %135 : vector<2x128xf32> to vector<2x128xbf16>
    %137 = arith.extf %136 : vector<2x128xbf16> to vector<2x128xf32>
    %138 = arith.subf %135, %137 : vector<2x128xf32>
    %139 = arith.truncf %138 : vector<2x128xf32> to vector<2x128xbf16>
    %cst_41 = arith.constant dense<0.000000e+00> : vector<2x8xf32>
    %140 = tpu.matmul %136, %129, %cst_41 {dimension_numbers = #tpu.dot_dimension_numbers<[1], [1], [0], [0], [0, 0, 1, 0], [], []>} : vector<2x128xbf16>, vector<8x128xbf16>, vector<2x8xf32> -> vector<2x8xf32>
    %cst_42 = arith.constant dense<0.000000e+00> : vector<2x8xf32>
    %141 = tpu.matmul %139, %129, %cst_42 {dimension_numbers = #tpu.dot_dimension_numbers<[1], [1], [0], [0], [0, 0, 1, 0], [], []>} : vector<2x128xbf16>, vector<8x128xbf16>, vector<2x8xf32> -> vector<2x8xf32>
    %142 = arith.addf %140, %141 : vector<2x8xf32>
    %143 = vector.extract_strided_slice %142 {offsets = [0, 0], sizes = [1, 8], strides = [1, 1]} : vector<2x8xf32> to vector<1x8xf32>
    %cst_43 = arith.constant 0.0113636367 : f32
    %144 = vector.broadcast %cst_43 : f32 to vector<1x8xf32>
    %145 = arith.mulf %143, %144 : vector<1x8xf32>
    %146 = vector.extract_strided_slice %142 {offsets = [1, 0], sizes = [1, 8], strides = [1, 1]} : vector<2x8xf32> to vector<1x8xf32>
    %cst_44 = arith.constant 0.0113636367 : f32
    %147 = vector.broadcast %cst_44 : f32 to vector<1x8xf32>
    %148 = arith.mulf %146, %147 : vector<1x8xf32>
    %149 = arith.mulf %145, %145 : vector<1x8xf32>
    %150 = arith.subf %148, %149 : vector<1x8xf32>
    %cst_45 = arith.constant 0.000000e+00 : f32
    %151 = vector.broadcast %cst_45 : f32 to vector<1x8xf32>
    %152 = arith.maximumf %150, %151 : vector<1x8xf32>
    %cst_46 = arith.constant 9.99999974E-6 : f32
    %153 = vector.broadcast %cst_46 : f32 to vector<1x8xf32>
    %154 = arith.addf %152, %153 : vector<1x8xf32>
    %155 = math.rsqrt %154 : vector<1x8xf32>
    %c32 = arith.constant 32 : index
    %c0_47 = arith.constant 0 : index
    %156 = vector.load %arg5[%c32, %c0_47] : memref<39x512xf32, #tpu.memory_space<vmem>>, vector<1x8xf32>
    %157 = arith.mulf %156, %155 : vector<1x8xf32>
    %c36 = arith.constant 36 : index
    %c0_48 = arith.constant 0 : index
    %158 = vector.load %arg5[%c36, %c0_48] : memref<39x512xf32, #tpu.memory_space<vmem>>, vector<1x8xf32>
    %159 = arith.mulf %145, %157 : vector<1x8xf32>
    %160 = arith.subf %158, %159 : vector<1x8xf32>
    %161 = tpu.concatenate %157, %160 in 0 : vector<1x8xf32>, vector<1x8xf32> -> vector<2x8xf32>
    %162 = arith.truncf %161 : vector<2x8xf32> to vector<2x8xbf16>
    %163 = arith.extf %162 : vector<2x8xbf16> to vector<2x8xf32>
    %164 = arith.subf %161, %163 : vector<2x8xf32>
    %165 = arith.truncf %164 : vector<2x8xf32> to vector<2x8xbf16>
    %cst_49 = arith.constant dense<0.000000e+00> : vector<2x128xf32>
    %166 = tpu.matmul %162, %129, %cst_49 {dimension_numbers = #tpu.dot_dimension_numbers<[1], [0], [0], [1], [0, 0, 1, 1], [], []>} : vector<2x8xbf16>, vector<8x128xbf16>, vector<2x128xf32> -> vector<2x128xf32>
    %cst_50 = arith.constant dense<0.000000e+00> : vector<2x128xf32>
    %167 = tpu.matmul %165, %129, %cst_50 {dimension_numbers = #tpu.dot_dimension_numbers<[1], [0], [0], [1], [0, 0, 1, 1], [], []>} : vector<2x8xbf16>, vector<8x128xbf16>, vector<2x128xf32> -> vector<2x128xf32>
    %168 = arith.addf %166, %167 : vector<2x128xf32>
    %169 = vector.extract_strided_slice %168 {offsets = [0, 0], sizes = [1, 128], strides = [1, 1]} : vector<2x128xf32> to vector<1x128xf32>
    %170 = vector.broadcast %169 : vector<1x128xf32> to vector<8x128xf32>
    %171 = arith.mulf %128, %170 : vector<8x128xf32>
    %172 = vector.extract_strided_slice %168 {offsets = [1, 0], sizes = [1, 128], strides = [1, 1]} : vector<2x128xf32> to vector<1x128xf32>
    %173 = vector.broadcast %172 : vector<1x128xf32> to vector<8x128xf32>
    %174 = arith.addf %171, %173 : vector<8x128xf32>
    %c0_51 = arith.constant 0 : index
    %c128_52 = arith.constant 128 : index
    %175 = vector.load %arg1[%c0_51, %c128_52] : memref<128x384xbf16, #tpu.memory_space<vmem>>, vector<128x256xbf16>
    %176 = arith.truncf %174 : vector<8x128xf32> to vector<8x128xbf16>
    %cst_53 = arith.constant dense<0.000000e+00> : vector<8x256xf32>
    %177 = tpu.matmul %176, %175, %cst_53 {dimension_numbers = #tpu.dot_dimension_numbers<[1], [0], [0], [1], [0, 0, 1, 1], [], []>} : vector<8x128xbf16>, vector<128x256xbf16>, vector<8x256xf32> -> vector<8x256xf32>
    %c29 = arith.constant 29 : index
    %c0_54 = arith.constant 0 : index
    %178 = vector.load %arg5[%c29, %c0_54] : memref<39x512xf32, #tpu.memory_space<vmem>>, vector<1x256xf32>
    %179 = vector.broadcast %178 : vector<1x256xf32> to vector<8x256xf32>
    %180 = arith.addf %177, %179 : vector<8x256xf32>
    %cst_55 = arith.constant 0.00999999977 : f32
    %181 = vector.broadcast %cst_55 : f32 to vector<8x256xf32>
    %182 = arith.mulf %181, %180 : vector<8x256xf32>
    %183 = arith.maximumf %180, %182 : vector<8x256xf32>
    %c0_56 = arith.constant 0 : index
    %c256 = arith.constant 256 : index
    %184 = vector.load %arg4[%c0_56, %c256] : memref<8x1024xbf16, #tpu.memory_space<vmem>>, vector<8x256xbf16>
    %cst_57 = arith.constant dense<0.000000e+00> : vector<256xf32>
    %185 = vector.multi_reduction <add>, %183, %cst_57 [0] : vector<8x256xf32> to vector<256xf32>
    %186 = vector.shape_cast %185 : vector<256xf32> to vector<1x256xf32>
    %187 = arith.mulf %183, %183 : vector<8x256xf32>
    %cst_58 = arith.constant dense<0.000000e+00> : vector<256xf32>
    %188 = vector.multi_reduction <add>, %187, %cst_58 [0] : vector<8x256xf32> to vector<256xf32>
    %189 = vector.shape_cast %188 : vector<256xf32> to vector<1x256xf32>
    %190 = tpu.concatenate %186, %189 in 0 : vector<1x256xf32>, vector<1x256xf32> -> vector<2x256xf32>
    %191 = arith.truncf %190 : vector<2x256xf32> to vector<2x256xbf16>
    %192 = arith.extf %191 : vector<2x256xbf16> to vector<2x256xf32>
    %193 = arith.subf %190, %192 : vector<2x256xf32>
    %194 = arith.truncf %193 : vector<2x256xf32> to vector<2x256xbf16>
    %cst_59 = arith.constant dense<0.000000e+00> : vector<2x8xf32>
    %195 = tpu.matmul %191, %184, %cst_59 {dimension_numbers = #tpu.dot_dimension_numbers<[1], [1], [0], [0], [0, 0, 1, 0], [], []>} : vector<2x256xbf16>, vector<8x256xbf16>, vector<2x8xf32> -> vector<2x8xf32>
    %cst_60 = arith.constant dense<0.000000e+00> : vector<2x8xf32>
    %196 = tpu.matmul %194, %184, %cst_60 {dimension_numbers = #tpu.dot_dimension_numbers<[1], [1], [0], [0], [0, 0, 1, 0], [], []>} : vector<2x256xbf16>, vector<8x256xbf16>, vector<2x8xf32> -> vector<2x8xf32>
    %197 = arith.addf %195, %196 : vector<2x8xf32>
    %198 = vector.extract_strided_slice %197 {offsets = [0, 0], sizes = [1, 8], strides = [1, 1]} : vector<2x8xf32> to vector<1x8xf32>
    %cst_61 = arith.constant 5.000000e-03 : f32
    %199 = vector.broadcast %cst_61 : f32 to vector<1x8xf32>
    %200 = arith.mulf %198, %199 : vector<1x8xf32>
    %201 = vector.extract_strided_slice %197 {offsets = [1, 0], sizes = [1, 8], strides = [1, 1]} : vector<2x8xf32> to vector<1x8xf32>
    %cst_62 = arith.constant 5.000000e-03 : f32
    %202 = vector.broadcast %cst_62 : f32 to vector<1x8xf32>
    %203 = arith.mulf %201, %202 : vector<1x8xf32>
    %204 = arith.mulf %200, %200 : vector<1x8xf32>
    %205 = arith.subf %203, %204 : vector<1x8xf32>
    %cst_63 = arith.constant 0.000000e+00 : f32
    %206 = vector.broadcast %cst_63 : f32 to vector<1x8xf32>
    %207 = arith.maximumf %205, %206 : vector<1x8xf32>
    %cst_64 = arith.constant 9.99999974E-6 : f32
    %208 = vector.broadcast %cst_64 : f32 to vector<1x8xf32>
    %209 = arith.addf %207, %208 : vector<1x8xf32>
    %210 = math.rsqrt %209 : vector<1x8xf32>
    %c33 = arith.constant 33 : index
    %c0_65 = arith.constant 0 : index
    %211 = vector.load %arg5[%c33, %c0_65] : memref<39x512xf32, #tpu.memory_space<vmem>>, vector<1x8xf32>
    %212 = arith.mulf %211, %210 : vector<1x8xf32>
    %c37 = arith.constant 37 : index
    %c0_66 = arith.constant 0 : index
    %213 = vector.load %arg5[%c37, %c0_66] : memref<39x512xf32, #tpu.memory_space<vmem>>, vector<1x8xf32>
    %214 = arith.mulf %200, %212 : vector<1x8xf32>
    %215 = arith.subf %213, %214 : vector<1x8xf32>
    %216 = tpu.concatenate %212, %215 in 0 : vector<1x8xf32>, vector<1x8xf32> -> vector<2x8xf32>
    %217 = arith.truncf %216 : vector<2x8xf32> to vector<2x8xbf16>
    %218 = arith.extf %217 : vector<2x8xbf16> to vector<2x8xf32>
    %219 = arith.subf %216, %218 : vector<2x8xf32>
    %220 = arith.truncf %219 : vector<2x8xf32> to vector<2x8xbf16>
    %cst_67 = arith.constant dense<0.000000e+00> : vector<2x256xf32>
    %221 = tpu.matmul %217, %184, %cst_67 {dimension_numbers = #tpu.dot_dimension_numbers<[1], [0], [0], [1], [0, 0, 1, 1], [], []>} : vector<2x8xbf16>, vector<8x256xbf16>, vector<2x256xf32> -> vector<2x256xf32>
    %cst_68 = arith.constant dense<0.000000e+00> : vector<2x256xf32>
    %222 = tpu.matmul %220, %184, %cst_68 {dimension_numbers = #tpu.dot_dimension_numbers<[1], [0], [0], [1], [0, 0, 1, 1], [], []>} : vector<2x8xbf16>, vector<8x256xbf16>, vector<2x256xf32> -> vector<2x256xf32>
    %223 = arith.addf %221, %222 : vector<2x256xf32>
    %224 = vector.extract_strided_slice %223 {offsets = [0, 0], sizes = [1, 256], strides = [1, 1]} : vector<2x256xf32> to vector<1x256xf32>
    %225 = vector.broadcast %224 : vector<1x256xf32> to vector<8x256xf32>
    %226 = arith.mulf %183, %225 : vector<8x256xf32>
    %227 = vector.extract_strided_slice %223 {offsets = [1, 0], sizes = [1, 256], strides = [1, 1]} : vector<2x256xf32> to vector<1x256xf32>
    %228 = vector.broadcast %227 : vector<1x256xf32> to vector<8x256xf32>
    %229 = arith.addf %226, %228 : vector<8x256xf32>
    %c0_69 = arith.constant 0 : index
    %c0_70 = arith.constant 0 : index
    %230 = vector.load %arg2[%c0_69, %c0_70] : memref<256x512xbf16, #tpu.memory_space<vmem>>, vector<256x512xbf16>
    %231 = arith.truncf %229 : vector<8x256xf32> to vector<8x256xbf16>
    %cst_71 = arith.constant dense<0.000000e+00> : vector<8x512xf32>
    %232 = tpu.matmul %231, %230, %cst_71 {dimension_numbers = #tpu.dot_dimension_numbers<[1], [0], [0], [1], [0, 0, 1, 1], [], []>} : vector<8x256xbf16>, vector<256x512xbf16>, vector<8x512xf32> -> vector<8x512xf32>
    %c30 = arith.constant 30 : index
    %c0_72 = arith.constant 0 : index
    %233 = vector.load %arg5[%c30, %c0_72] : memref<39x512xf32, #tpu.memory_space<vmem>>, vector<1x512xf32>
    %234 = vector.broadcast %233 : vector<1x512xf32> to vector<8x512xf32>
    %235 = arith.addf %232, %234 : vector<8x512xf32>
    %cst_73 = arith.constant 0.00999999977 : f32
    %236 = vector.broadcast %cst_73 : f32 to vector<8x512xf32>
    %237 = arith.mulf %236, %235 : vector<8x512xf32>
    %238 = arith.maximumf %235, %237 : vector<8x512xf32>
    %c0_74 = arith.constant 0 : index
    %c512 = arith.constant 512 : index
    %239 = vector.load %arg4[%c0_74, %c512] : memref<8x1024xbf16, #tpu.memory_space<vmem>>, vector<8x512xbf16>
    %cst_75 = arith.constant dense<0.000000e+00> : vector<512xf32>
    %240 = vector.multi_reduction <add>, %238, %cst_75 [0] : vector<8x512xf32> to vector<512xf32>
    %241 = vector.shape_cast %240 : vector<512xf32> to vector<1x512xf32>
    %242 = arith.mulf %238, %238 : vector<8x512xf32>
    %cst_76 = arith.constant dense<0.000000e+00> : vector<512xf32>
    %243 = vector.multi_reduction <add>, %242, %cst_76 [0] : vector<8x512xf32> to vector<512xf32>
    %244 = vector.shape_cast %243 : vector<512xf32> to vector<1x512xf32>
    %245 = tpu.concatenate %241, %244 in 0 : vector<1x512xf32>, vector<1x512xf32> -> vector<2x512xf32>
    %246 = arith.truncf %245 : vector<2x512xf32> to vector<2x512xbf16>
    %247 = arith.extf %246 : vector<2x512xbf16> to vector<2x512xf32>
    %248 = arith.subf %245, %247 : vector<2x512xf32>
    %249 = arith.truncf %248 : vector<2x512xf32> to vector<2x512xbf16>
    %cst_77 = arith.constant dense<0.000000e+00> : vector<2x8xf32>
    %250 = tpu.matmul %246, %239, %cst_77 {dimension_numbers = #tpu.dot_dimension_numbers<[1], [1], [0], [0], [0, 0, 1, 0], [], []>} : vector<2x512xbf16>, vector<8x512xbf16>, vector<2x8xf32> -> vector<2x8xf32>
    %cst_78 = arith.constant dense<0.000000e+00> : vector<2x8xf32>
    %251 = tpu.matmul %249, %239, %cst_78 {dimension_numbers = #tpu.dot_dimension_numbers<[1], [1], [0], [0], [0, 0, 1, 0], [], []>} : vector<2x512xbf16>, vector<8x512xbf16>, vector<2x8xf32> -> vector<2x8xf32>
    %252 = arith.addf %250, %251 : vector<2x8xf32>
    %253 = vector.extract_strided_slice %252 {offsets = [0, 0], sizes = [1, 8], strides = [1, 1]} : vector<2x8xf32> to vector<1x8xf32>
    %cst_79 = arith.constant 0.0023584906 : f32
    %254 = vector.broadcast %cst_79 : f32 to vector<1x8xf32>
    %255 = arith.mulf %253, %254 : vector<1x8xf32>
    %256 = vector.extract_strided_slice %252 {offsets = [1, 0], sizes = [1, 8], strides = [1, 1]} : vector<2x8xf32> to vector<1x8xf32>
    %cst_80 = arith.constant 0.0023584906 : f32
    %257 = vector.broadcast %cst_80 : f32 to vector<1x8xf32>
    %258 = arith.mulf %256, %257 : vector<1x8xf32>
    %259 = arith.mulf %255, %255 : vector<1x8xf32>
    %260 = arith.subf %258, %259 : vector<1x8xf32>
    %cst_81 = arith.constant 0.000000e+00 : f32
    %261 = vector.broadcast %cst_81 : f32 to vector<1x8xf32>
    %262 = arith.maximumf %260, %261 : vector<1x8xf32>
    %cst_82 = arith.constant 9.99999974E-6 : f32
    %263 = vector.broadcast %cst_82 : f32 to vector<1x8xf32>
    %264 = arith.addf %262, %263 : vector<1x8xf32>
    %265 = math.rsqrt %264 : vector<1x8xf32>
    %c34 = arith.constant 34 : index
    %c0_83 = arith.constant 0 : index
    %266 = vector.load %arg5[%c34, %c0_83] : memref<39x512xf32, #tpu.memory_space<vmem>>, vector<1x8xf32>
    %267 = arith.mulf %266, %265 : vector<1x8xf32>
    %c38 = arith.constant 38 : index
    %c0_84 = arith.constant 0 : index
    %268 = vector.load %arg5[%c38, %c0_84] : memref<39x512xf32, #tpu.memory_space<vmem>>, vector<1x8xf32>
    %269 = arith.mulf %255, %267 : vector<1x8xf32>
    %270 = arith.subf %268, %269 : vector<1x8xf32>
    %271 = tpu.concatenate %267, %270 in 0 : vector<1x8xf32>, vector<1x8xf32> -> vector<2x8xf32>
    %272 = arith.truncf %271 : vector<2x8xf32> to vector<2x8xbf16>
    %273 = arith.extf %272 : vector<2x8xbf16> to vector<2x8xf32>
    %274 = arith.subf %271, %273 : vector<2x8xf32>
    %275 = arith.truncf %274 : vector<2x8xf32> to vector<2x8xbf16>
    %cst_85 = arith.constant dense<0.000000e+00> : vector<2x512xf32>
    %276 = tpu.matmul %272, %239, %cst_85 {dimension_numbers = #tpu.dot_dimension_numbers<[1], [0], [0], [1], [0, 0, 1, 1], [], []>} : vector<2x8xbf16>, vector<8x512xbf16>, vector<2x512xf32> -> vector<2x512xf32>
    %cst_86 = arith.constant dense<0.000000e+00> : vector<2x512xf32>
    %277 = tpu.matmul %275, %239, %cst_86 {dimension_numbers = #tpu.dot_dimension_numbers<[1], [0], [0], [1], [0, 0, 1, 1], [], []>} : vector<2x8xbf16>, vector<8x512xbf16>, vector<2x512xf32> -> vector<2x512xf32>
    %278 = arith.addf %276, %277 : vector<2x512xf32>
    %279 = vector.extract_strided_slice %278 {offsets = [0, 0], sizes = [1, 512], strides = [1, 1]} : vector<2x512xf32> to vector<1x512xf32>
    %280 = vector.broadcast %279 : vector<1x512xf32> to vector<8x512xf32>
    %281 = arith.mulf %238, %280 : vector<8x512xf32>
    %282 = vector.extract_strided_slice %278 {offsets = [1, 0], sizes = [1, 512], strides = [1, 1]} : vector<2x512xf32> to vector<1x512xf32>
    %283 = vector.broadcast %282 : vector<1x512xf32> to vector<8x512xf32>
    %284 = arith.addf %281, %283 : vector<8x512xf32>
    %c0_87 = arith.constant 0 : index
    %c0_88 = arith.constant 0 : index
    %285 = vector.load %arg3[%c0_87, %c0_88] : memref<512x256xbf16, #tpu.memory_space<vmem>>, vector<512x256xbf16>
    %286 = arith.truncf %284 : vector<8x512xf32> to vector<8x512xbf16>
    %cst_89 = arith.constant dense<0.000000e+00> : vector<8x256xf32>
    %287 = tpu.matmul %286, %285, %cst_89 {dimension_numbers = #tpu.dot_dimension_numbers<[1], [0], [0], [1], [0, 0, 1, 1], [], []>} : vector<8x512xbf16>, vector<512x256xbf16>, vector<8x256xf32> -> vector<8x256xf32>
    %cst_90 = arith.constant 5.000000e-01 : f32
    %288 = vector.broadcast %cst_90 : f32 to vector<8x256xf32>
    %289 = arith.mulf %288, %287 : vector<8x256xf32>
    %290 = math.tanh %289 : vector<8x256xf32>
    %cst_91 = arith.constant 1.000000e+00 : f32
    %291 = vector.broadcast %cst_91 : f32 to vector<8x256xf32>
    %292 = arith.addf %291, %290 : vector<8x256xf32>
    %cst_92 = arith.constant 5.000000e-01 : f32
    %293 = vector.broadcast %cst_92 : f32 to vector<8x256xf32>
    %294 = arith.mulf %293, %292 : vector<8x256xf32>
    %c0_93 = arith.constant 0 : index
    %c0_94 = arith.constant 0 : index
    %295 = vector.load %arg6[%c0_93, %c0_94] : memref<8x256xf32, #tpu.memory_space<vmem>>, vector<8x256xf32>
    tpu.vector_store %arg6[%c0_93, %c0_94], %294 {strides = array<i32>} : memref<8x256xf32, #tpu.memory_space<vmem>>, vector<8x256xf32>,
    return
  }
}

</mosaic_0001>

<bundles_post_ra>
// kernel: forward.1
= control target key start
LH: loop header
LB: loop body
LE: loop exit
PB: predicated region body
PF: predicated region fallthrough
CT: control target
= control target key end

     0   :  { %11 = vsyncpa [#allocation3], 0  ;;  %s3802_s0 = inlined_call_operand.vmem [shape: f32[8,128], index: 0, kind: input, shape index: {}]   ;;  %s3803_s1 = inlined_call_operand.hbm [shape: bf16[128,384], index: 1, kind: input, shape index: {}]   ;;  %s3804_s2 = inlined_call_operand.hbm [shape: bf16[256,512], index: 2, kind: input, shape index: {}]   ;;  %s3805_s3 = inlined_call_operand.hbm [shape: bf16[512,256], index: 3, kind: input, shape index: {}]   ;;  %s3806_s4 = inlined_call_operand.vmem [shape: bf16[8,1024], index: 4, kind: input, shape index: {}]   ;;  %s3807_s5 = inlined_call_operand.hbm [shape: f32[39,512], index: 5, kind: input, shape index: {}]   ;;  %s3808_s6 = inlined_call_operand.vmem [shape: f32[8,256], index: 6, kind: output, shape index: {}]  }
   0x1   :  { %12 = vsyncpa [#allocation5], 0 }
   0x2   :  { %13 = vsyncpa [#allocation8], 0  ;;  %s3455_s21 = smov [#allocation4]   ;;  %s3361_s25 = scalar_lea.hbm %s3804_s2, 8192 }
   0x3   :  { %s33_s22 = sshll.u32 %s3455_s21, 4  ;;  %p3362_p0 = scmp.ne.s32.totalorder %s3804_s2, %s3361_s25  ;;  %s34_s22 = int_to_ptr.vmem [resolvable:$true] %s33_s22 }
   0x4   :  { %p3365_p1 = scmp.lt.u32.totalorder %s3361_s25, %s3804_s2 }
   0x6   :  { %p3367_p2 = pnand %p3365_p1, %p3362_p0 }
   0x8   :  { %3370 = shalt.err (!%p3367_p2)
}
   0x9   :  { %s3371_s30 = scalar_lea.vmem %s34_s22, 8192  ;;  %p3376_p4 = scmp.lt.s32.totalorder %s34_s22, %s34_s22 }
   0xa   :  { %p3372_p3 = scmp.ne.s32.totalorder %s34_s22, %s3371_s30  ;;  %p3377_p5 = scmp.lt.s32.totalorder %s3371_s30, %s3371_s30 }
   0xc   :  { %p3378_p6 = por %p3377_p5, %p3376_p4 }
   0xe   :  { %p3379_p7 = pnand %p3378_p6, %p3372_p3 }
  0x10   :  { %3382 = shalt.err (!%p3379_p7)
}
  0x11   :  { %s3456_s7 = smov 256   ;;  %s3457_s8 = smov 16  }
  0x12   :  { %39 = dma.hbm_to_vmem [thread:$0]  %s3804_s2, 8192, %s34_s22, [#allocation5], %s3456_s7, %s3456_s7, %s3457_s8  }
  0x13   :  { %s3458_s11 = smov [#allocation2]   ;;  %s3383_s15 = scalar_lea.hbm %s3803_s1, 3072 }
  0x14   :  { %s21_s12 = sshll.u32 %s3458_s11, 4  ;;  %p3384_p8 = scmp.ne.s32.totalorder %s3803_s1, %s3383_s15  ;;  %s22_s12 = int_to_ptr.vmem [resolvable:$true] %s21_s12 }
  0x15   :  { %p3387_p9 = scmp.lt.u32.totalorder %s3383_s15, %s3803_s1 }
  0x17   :  { %p3389_p10 = pnand %p3387_p9, %p3384_p8 }
  0x19   :  { %3392 = shalt.err (!%p3389_p10)
}
  0x1a   :  { %s3393_s20 = scalar_lea.vmem %s22_s12, 3072  ;;  %p3398_p12 = scmp.lt.s32.totalorder %s22_s12, %s22_s12 }
  0x1b   :  { %p3394_p11 = scmp.ne.s32.totalorder %s22_s12, %s3393_s20  ;;  %p3399_p13 = scmp.lt.s32.totalorder %s3393_s20, %s3393_s20 }
  0x1d   :  { %p3400_p0 = por %p3399_p13, %p3398_p12 }
  0x1f   :  { %p3401_p1 = pnand %p3400_p0, %p3394_p11 }
  0x21   :  { %3404 = shalt.err (!%p3401_p1)
}
  0x22   :  { %s3459_s2 = smov 192   ;;  %s3460_s21 = smov 12  }
  0x23   :  { %27 = dma.hbm_to_vmem [thread:$0]  %s3803_s1, 3072, %s22_s12, [#allocation3], %s3459_s2, %s3459_s2, %s3460_s21  }
  0x24   :  { %s3461_s24 = smov [#allocation6]   ;;  %s3405_s28 = scalar_lea.hbm %s3805_s3, 8192 }
  0x25   :  { %s45_s25 = sshll.u32 %s3461_s24, 4  ;;  %p3406_p2 = scmp.ne.s32.totalorder %s3805_s3, %s3405_s28  ;;  %s46_s25 = int_to_ptr.vmem [resolvable:$true] %s45_s25 }
  0x26   :  { %p3409_p3 = scmp.lt.u32.totalorder %s3405_s28, %s3805_s3 }
  0x28   :  { %p3411_p4 = pnand %p3409_p3, %p3406_p2 }
  0x2a   :  { %3414 = shalt.err (!%p3411_p4)
}
  0x2b   :  { %s3415_s9 = scalar_lea.vmem %s46_s25, 8192  ;;  %p3420_p6 = scmp.lt.s32.totalorder %s46_s25, %s46_s25 }
  0x2c   :  { %p3416_p5 = scmp.ne.s32.totalorder %s46_s25, %s3415_s9  ;;  %p3421_p7 = scmp.lt.s32.totalorder %s3415_s9, %s3415_s9 }
  0x2e   :  { %p3422_p8 = por %p3421_p7, %p3420_p6 }
  0x30   :  { %p3423_p9 = pnand %p3422_p8, %p3416_p5 }
  0x32   :  { %3426 = shalt.err (!%p3423_p9)
}
  0x33   :  { %s3462_s1 = smov 128   ;;  %s3463_s10 = smov 8  }
  0x34   :  { %51 = dma.hbm_to_vmem [thread:$0]  %s3805_s3, 8192, %s46_s25, [#allocation5], %s3462_s1, %s3462_s1, %s3463_s10  }
  0x35   :  { %s3464_s13 = smov [#allocation7]   ;;  %s3427_s17 = scalar_lea.hbm %s3807_s5, 2560 }
  0x36   :  { %s59_s14 = sshll.u32 %s3464_s13, 4  ;;  %p3428_p10 = scmp.ne.s32.totalorder %s3807_s5, %s3427_s17  ;;  %s60_s14 = int_to_ptr.vmem [resolvable:$true] %s59_s14 }
  0x37   :  { %p3431_p11 = scmp.lt.u32.totalorder %s3427_s17, %s3807_s5 }
  0x39   :  { %p3433_p12 = pnand %p3431_p11, %p3428_p10 }
  0x3b   :  { %3436 = shalt.err (!%p3433_p12)
}
  0x3c   :  { %s3437_s21 = scalar_lea.vmem %s60_s14, 2560  ;;  %p3442_p0 = scmp.lt.s32.totalorder %s60_s14, %s60_s14 }
  0x3d   :  { %p3438_p13 = scmp.ne.s32.totalorder %s60_s14, %s3437_s21  ;;  %p3443_p1 = scmp.lt.s32.totalorder %s3437_s21, %s3437_s21 }
  0x3f   :  { %p3444_p2 = por %p3443_p1, %p3442_p0 }
  0x41   :  { %p3445_p3 = pnand %p3444_p2, %p3438_p13 }
  0x43   :  { %3448 = shalt.err (!%p3445_p3)
}
  0x44   :  { %s3465_s3 = smov 512   ;;  %s3466_s22 = smov 32  }
  0x45   :  { %65 = dma.hbm_to_vmem [thread:$0]  %s3807_s5, 2560, %s60_s14, [#allocation8], %s3465_s3, %s3465_s3, %s3466_s22  }
  0x46   :  { %3449 = dma.done.wait [#allocation3], 3072  }
  0x47   :  { %3450 = vsyncadd [#allocation3], 4294964224 }
  0x48   :  { %3451 = dma.done.wait [#allocation5], 16384  }
  0x49   :  { %3452 = vsyncadd [#allocation5], 4294950912 }
  0x4a   :  { %3453 = dma.done.wait [#allocation8], 2560  }
  0x4b   :  { %3454 = vsyncadd [#allocation8], 4294964736  ;;  %v3467_v0 = vmov 8   ;;  %v79_v1 = vld [vmem:[%s3802_s0] sm:$0xff]  ;;  %v3468_v2 = vmov 1   ;;  %v3469_v3 = vmov 0  }
  0x4c   :  { %3110 = vset.pattern.permute.xlu0 %v3467_v0  ;;  %3112 = vset.pattern.permute.xlu1 %v3468_v2  ;;  %v81_v4 = vld [vmem:[#allocation7 + $0x60] ss:$0 sm:$0xff]  ;;  %v80_v5 = vld [vmem:[#allocation7 + $0x61] ss:$0 sm:$0xff]  ;;  %v3470_v11 = vmov 2   ;;  %v3471_v12 = vmov 4  }
  0x4d   :  { %84 = vperm.xlu0 %3110, %v79_v1   ;;  %v3472_v13 = vmov 3   ;;  %v3473_v14 = vmov 7   ;;  %v3474_v15 = vmov 5   ;;  %v3475_v16 = vmov 6   ;;  %v149_v18 = vld [vmem:[#allocation7] sm:$0xff] }
  0x4e   :  { %v3476_v17 = vmov 0.0   ;;  %vm3477_vm0 = vmmov 0   ;;  %v150_v19 = vld [vmem:[#allocation7 + $0x20] sm:$0xff]  ;;  %vm151_vm1 = vcmask 64512   ;;  %vm315_vm2 = vcmask 1040384  }
  0x4f   :  { %2966 = vmatprep.subr.mxu1 %v3476_v17  ;;  %2961 = vmatprep.subr.mxu0 %v3476_v17  ;;  %v92_v20 = vld [vmem:[#allocation7 + $0x40] ss:$0 sm:$0xff]  ;;  %v91_v22 = vld [vmem:[#allocation7 + $0x62] ss:$0 sm:$0xff]  ;;  %v100_v25 = vld [vmem:[#allocation7 + $0x41] ss:$0 sm:$0xff] }
  0x50   :  { %2967 = vmatpush3.msra.mxu1 %v149_v18  ;;  %2968 = vmatprep.mubr.msk.f32.mxu1 %vm3477_vm0, %v3476_v17  ;;  %v107_v27 = vld [vmem:[#allocation7 + $0x42] ss:$0 sm:$0xff]  ;;  %v114_v32 = vld [vmem:[#allocation7 + $0x43] ss:$0 sm:$0xff]  ;;  %v121_v36 = vld [vmem:[#allocation7 + $0x44] ss:$0 sm:$0xff] }
  0x51   :  { %3111 = vset.pattern.permute.xlu0 %v3469_v3  ;;  %2962 = vmatpush3.msra.mxu0 %v150_v19  ;;  %v128_v39 = vld [vmem:[#allocation7 + $0x45] ss:$0 sm:$0xff]  ;;  %v135_v44 = vld [vmem:[#allocation7 + $0x46] ss:$0 sm:$0xff]  ;;  %v142_v45 = vld [vmem:[#allocation7 + $0x47] ss:$0 sm:$0xff] }
  0x52   :  { %2963 = vmatprep.mubr.msk.f32.mxu0 %vm3477_vm0, %v3476_v17  ;;  %2969 = vmatmul.mubr.msk.f32.vlgmr.msra.gmra.mrb[0].mxu1 %vm151_vm1, %v79_v1  ;;  %v301_v55 = vld [vmem:[%s3806_s4] sm:$0xf]  ;;  %vm429_vm3 = vcmask 1043456  }
  0x53   :  { %2971 = vmatprep.subr.bf16.mxu0 %v3476_v17  ;;  %2983 = vmatprep.subr.bf16.mxu1 %v3476_v17  ;;  %v297_v57 = vld [vmem:[#allocation7 + $0x63] ss:$0 sm:$0xff]  ;;  %v431_v19 = vsel %vm429_vm3, %v301_v55, 0 }
  0x54   :  { %2985 = vmatprep.mubr.msk.bf16.mxu1 %vm3477_vm0, %v3476_v17  ;;  %2984 = vmatpush3.bf16.msra.mxu1 %v431_v19 }
  0x55   :  { %2989 = vmatprep.subr.bf16.mxu1 %v3476_v17 }
  0xcc   :  { %v85_v6 = vpop.permute.xlu0 %84 }
  0xcd   :  { %v87_v7 = vmul.f32 %v85_v6, %v81_v4 }
  0xcf   :  { %v88_v8 = vadd.f32 %v87_v7, %v80_v5 }
  0xd1   :  { %v89_v9 = vmul.f32 0.01, %v88_v8 }
  0xd3   :  { %v90_v10 = vmax.f32 %v88_v8, %v89_v9 }
  0xd5   :  { %102 = vperm.xlu1 %3112, %v90_v10   ;;  %95 = vperm.xlu0 %3111, %v90_v10  }
  0xd9   :  { %3113 = vset.pattern.permute.xlu1 %v3470_v11  ;;  %3115 = vset.pattern.permute.xlu0 %v3471_v12 }
  0xda   :  { %109 = vperm.xlu1 %3113, %v90_v10   ;;  %123 = vperm.xlu0 %3115, %v90_v10  }
  0xde   :  { %3114 = vset.pattern.permute.xlu1 %v3472_v13  ;;  %3118 = vset.pattern.permute.xlu0 %v3473_v14 }
  0xdf   :  { %116 = vperm.xlu1 %3114, %v90_v10   ;;  %144 = vperm.xlu0 %3118, %v90_v10  }
  0xe3   :  { %3116 = vset.pattern.permute.xlu1 %v3474_v15 }
  0xe4   :  { %130 = vperm.xlu1 %3116, %v90_v10  }
  0xe8   :  { %3117 = vset.pattern.permute.xlu1 %v3475_v16 }
  0xe9   :  { %137 = vperm.xlu1 %3117, %v90_v10  }
 0x125   :  { %v293_v53 = vpop.f32.mrb[0].mxu1 }
 0x126   :  { %v2970_v54 = vpop.f32.mrb[1].mxu1 }
 0x154   :  { %v103_v21 = vpop.permute.xlu1 %102  ;;  %v96_v23 = vpop.permute.xlu0 %95 }
 0x155   :  { %v98_v24 = vmul.f32 %v96_v23, %v92_v20  ;;  %v105_v28 = vmul.f32 %v103_v21, %v100_v25 }
 0x157   :  { %v99_v26 = vadd.f32 %v98_v24, %v91_v22 }
 0x159   :  { %v110_v29 = vpop.permute.xlu1 %109  ;;  %v106_v30 = vadd.f32 %v105_v28, %v99_v26  ;;  %v124_v37 = vpop.permute.xlu0 %123 }
 0x15a   :  { %v112_v31 = vmul.f32 %v110_v29, %v107_v27  ;;  %v126_v40 = vmul.f32 %v124_v37, %v121_v36 }
 0x15c   :  { %v113_v34 = vadd.f32 %v112_v31, %v106_v30  ;;  %v410_v30 = vld [vmem:[#allocation7 + $0x67] ss:$0 sm:$0xff] }
 0x15e   :  { %v117_v33 = vpop.permute.xlu1 %116  ;;  %v145_v46 = vpop.permute.xlu0 %144 }
 0x15f   :  { %v119_v35 = vmul.f32 %v117_v33, %v114_v32  ;;  %v147_v50 = vmul.f32 %v145_v46, %v142_v45  ;;  %v3121_v45 = vld [vmem:[#allocation2 + $0x30] ss:$12 sps:$4 sm:$0xff]   ;;  %v3122_v46 = vld [vmem:[#allocation2 + $0x48] ss:$12 sps:$4 sm:$0xff]  }
 0x161   :  { %v120_v38 = vadd.f32 %v119_v35, %v113_v34  ;;  %v412_v34 = vld [vmem:[#allocation7 + $0x83] ss:$0 sm:$0xff] }
 0x163   :  { %v131_v41 = vpop.permute.xlu1 %130  ;;  %v127_v42 = vadd.f32 %v126_v40, %v120_v38 }
 0x164   :  { %v133_v43 = vmul.f32 %v131_v41, %v128_v39 }
 0x166   :  { %v134_v48 = vadd.f32 %v133_v43, %v127_v42  ;;  %v3119_v43 = vld [vmem:[#allocation2] ss:$12 sps:$4 sm:$0xff]  }
 0x168   :  { %v138_v47 = vpop.permute.xlu1 %137 }
 0x169   :  { %v140_v49 = vmul.f32 %v138_v47, %v135_v44  ;;  %v3120_v44 = vld [vmem:[#allocation2 + $0x18] ss:$12 sps:$4 sm:$0xff]   ;;  %v3123_v47 = vld [vmem:[#allocation2 + $0x60] ss:$12 sps:$4 sm:$0xff]  }
 0x16b   :  { %v141_v51 = vadd.f32 %v140_v49, %v134_v48  ;;  %v3124_v48 = vld [vmem:[#allocation2 + $0x78] ss:$12 sps:$4 sm:$0xff]   ;;  %v3125_v49 = vld [vmem:[#allocation2 + $0x90] ss:$12 sps:$4 sm:$0xff]  }
 0x16d   :  { %v148_v52 = vadd.f32 %v147_v50, %v141_v51  ;;  %v3126_v50 = vld [vmem:[#allocation2 + $0xa8] ss:$12 sps:$4 sm:$0xff]   ;;  %v516_v51 = vlaneseq }
 0x16f   :  { %2964 = vmatmul.mubr.msk.f32.vlgmr.msra.gmra.mrb[0].mxu0 %vm151_vm1, %v148_v52  ;;  %v3612_v52 = vshrl.u32 %v516_v51, 7 }
 0x170   :  { %2973 = vmatprep.mubr.msk.bf16.mxu0 %vm3477_vm0, %v3476_v17  ;;  %2972 = vmatpush3.bf16.xpose.msra.mxu0 %v301_v55 }
 0x171   :  { %2977 = vmatprep.subr.bf16.mxu0 %v3476_v17  ;;  %v3618_v54 = vsub.s32 1, %v3612_v52 }
 0x242   :  { %v221_v56 = vpop.f32.mrb[0].mxu0 }
 0x243   :  { %v294_v58 = vadd.f32 %v293_v53, %v221_v56  ;;  %v2965_v59 = vpop.f32.mrb[1].mxu0  ;;  %v3615_v53 = vsub.s32 0, %v3612_v52 }
 0x245   :  { %v298_v60 = vadd.f32 %v297_v57, %v294_v58 }
 0x247   :  { %v299_v61 = vmul.f32 0.01, %v298_v60 }
 0x249   :  { %v3583_v62 = vmax.f32 %v298_v60, %v299_v61 }
 0x24b   :  { %v302_v63 = vrot.slane %v3583_v62, 4  ;;  %v308_v0 = vmul.f32 %v3583_v62, %v3583_v62 }
 0x24d   :  { %v303_v1 = vadd.f32 %v302_v63, %v3583_v62  ;;  %v309_v2 = vrot.slane %v308_v0, 4 }
 0x24f   :  { %v304_v4 = vrot.slane %v303_v1, 2  ;;  %v310_v5 = vadd.f32 %v309_v2, %v308_v0  ;;  %v543_v2 = vld [vmem:[#allocation7 + $0x64] ss:$0 sm:$0xff] }
 0x251   :  { %v305_v6 = vadd.f32 %v304_v4, %v303_v1  ;;  %v311_v7 = vrot.slane %v310_v5, 2  ;;  %v634_v1 = vld [vmem:[%s3806_s4 + $0x4] sm:$0xf] }
 0x253   :  { %v306_v8 = vrot.slane %v305_v6, 1  ;;  %v312_v9 = vadd.f32 %v311_v7, %v310_v5 }
 0x255   :  { %v313_v10 = vrot.slane %v312_v9, 1  ;;  %v307_v11 = vadd.f32 %v306_v8, %v305_v6 }
 0x257   :  { %v314_v12 = vadd.f32 %v313_v10, %v312_v9 }
 0x259   :  { %v316_v13 = vsel %vm315_vm2, %v307_v11, %v314_v12 }
 0x25a   :  { %v317_v14 = vpack.c.bf16 %v316_v13, %v316_v13 }
 0x25c   :  { %v318_v15 = vunpack.c.l.bf16 %v317_v14 }
 0x25e   :  { %v319_v16 = vsub.f32 %v316_v13, %v318_v15 }
 0x260   :  { %v320_v18 = vpack.c.bf16 %v319_v16, %v319_v16 }
 0x262   :  { %2974 = vmatmul.mubr.bf16.vlgmr.msra.gmra.mrb[4].mxu0 %v320_v18 }
 0x263   :  { %2978 = vmatpush3.bf16.xpose.msra.mxu0 %v301_v55  ;;  %2979 = vmatprep.mubr.msk.bf16.mxu0 %vm3477_vm0, %v3476_v17 }
 0x264   :  { %3015 = vmatprep.subr.bf16.mxu0 %v3476_v17 }
 0x26e   :  { %2980 = vmatmul.mubr.bf16.vlgmr.msra.gmra.mrb[4].mxu0 %v317_v14 }
 0x26f   :  { %3017 = vmatprep.mubr.msk.bf16.mxu0 %vm3477_vm0, %v3476_v17  ;;  %3016 = vmatpush3.bf16.xpose.msra.mxu0 %v634_v1 }
 0x270   :  { %3021 = vmatprep.subr.bf16.mxu0 %v3476_v17 }
 0x341   :  { %v395_v20 = vpop.f32.mrb[4].mxu0 }
 0x342   :  { %v401_v21 = vmul.f32 0.03125, %v395_v20  ;;  %v2981_v22 = vpop.f32.mrb[5].mxu0 }
 0x343   :  { %v398_v23 = vpop.f32.mrb[6].mxu0 }
 0x344   :  { %v402_v24 = vmul.f32 %v401_v21, %v401_v21  ;;  %v2982_v25 = vpop.f32.mrb[7].mxu0 }
 0x346   :  { %v404_v26 = vrot.slane %v402_v24, 7 }
 0x348   :  { %v406_v27 = vsub.f32 %v401_v21, %v404_v26 }
 0x34a   :  { %v407_v28 = vmax.f32 %v406_v27, 0.0 }
 0x34c   :  { %v408_v29 = vadd.f32 1e-05, %v407_v28 }
 0x34e   :  { %3349 = vrsqrt.f32 %v408_v29  ;;  %v762_v29 = vsel %vm429_vm3, %v634_v1, 0 }
 0x358   :  { %v3350_v31 = vpop.eup %3349 }
 0x359   :  { %v411_v32 = vmul.f32 %v3350_v31, %v410_v30  ;;  %v3127_v30 = vld [vmem:[#allocation2 + $0x4] ss:$12 sps:$4 sm:$0xff]   ;;  %v3129_v31 = vld [vmem:[#allocation2 + $0x8] ss:$12 sps:$4 sm:$0xff]  }
 0x35b   :  { %v414_v33 = vrot.slane %v411_v32, 1  ;;  %v3132_v32 = vld [vmem:[#allocation2 + $0x20] ss:$12 sps:$4 sm:$0xff]  }
 0x35d   :  { %v416_v35 = vmul.f32 %v414_v33, %v401_v21 }
 0x35f   :  { %v417_v36 = vsub.f32 %v412_v34, %v416_v35  ;;  %v3135_v34 = vld [vmem:[#allocation2 + $0x38] ss:$12 sps:$4 sm:$0xff]   ;;  %v3133_v35 = vld [vmem:[#allocation2 + $0x34] ss:$12 sps:$4 sm:$0xff]  }
 0x361   :  { %v419_v37 = vrot.slane %v417_v36, 7  ;;  %v3138_v36 = vld [vmem:[#allocation2 + $0x50] ss:$12 sps:$4 sm:$0xff]  }
 0x363   :  { %v421_v38 = vsel %vm315_vm2, %v414_v33, %v419_v37  ;;  %v3130_v33 = vld [vmem:[#allocation2 + $0x1c] ss:$12 sps:$4 sm:$0xff]   ;;  %v3136_v37 = vld [vmem:[#allocation2 + $0x4c] ss:$12 sps:$4 sm:$0xff]  }
 0x364   :  { %v422_v39 = vpack.c.bf16 %v421_v38, %v421_v38 }
 0x366   :  { %v423_v40 = vunpack.c.l.bf16 %v422_v39 }
 0x368   :  { %v424_v41 = vsub.f32 %v421_v38, %v423_v40  ;;  %v3141_v38 = vld [vmem:[#allocation2 + $0x68] ss:$12 sps:$4 sm:$0xff]   ;;  %v3144_v40 = vld [vmem:[#allocation2 + $0x80] ss:$12 sps:$4 sm:$0xff]  }
 0x36a   :  { %v425_v42 = vpack.c.bf16 %v424_v41, %v424_v41  ;;  %v3142_v41 = vld [vmem:[#allocation2 + $0x7c] ss:$12 sps:$4 sm:$0xff]  }
 0x36c   :  { %2986 = vmatmul.mubr.msk.bf16.vlgmr.msra.gmra.mrb[4].mxu1 %vm151_vm1, %v425_v42 }
 0x36d   :  { %2990 = vmatpush3.bf16.msra.mxu1 %v431_v19  ;;  %2991 = vmatprep.mubr.msk.bf16.mxu1 %vm3477_vm0, %v3476_v17 }
 0x36e   :  { %2995 = vmatprep.subr.bf16.mxu1 %v3476_v17 }
 0x378   :  { %2992 = vmatmul.mubr.msk.bf16.vlgmr.msra.gmra.mrb[4].mxu1 %vm151_vm1, %v422_v39  ;;  %v3139_v39 = vld [vmem:[#allocation2 + $0x64] ss:$12 sps:$4 sm:$0xff]  }
 0x379   :  { %2996 = vmatpush3.bf16.msra.mxu1 %v3119_v43  ;;  %3011 = vmatprep.mubr.msk.bf16.mxu1 %vm3477_vm0, %v3476_v17 }
 0x37a   :  { %2997 = vmatprep.subr.bf16.mxu1 %v3476_v17 }
 0x37d   :  { %2998 = vmatpush3.bf16.msra.mxu1 %v3120_v44 }
 0x37e   :  { %2999 = vmatprep.subr.bf16.mxu1 %v3476_v17 }
 0x381   :  { %3000 = vmatpush3.bf16.msra.mxu1 %v3121_v45 }
 0x382   :  { %3001 = vmatprep.subr.bf16.mxu1 %v3476_v17 }
 0x385   :  { %3002 = vmatpush3.bf16.msra.mxu1 %v3122_v46 }
 0x386   :  { %3003 = vmatprep.subr.bf16.mxu1 %v3476_v17 }
 0x389   :  { %3004 = vmatpush3.bf16.msra.mxu1 %v3123_v47 }
 0x38a   :  { %3005 = vmatprep.subr.bf16.mxu1 %v3476_v17 }
 0x38d   :  { %3006 = vmatpush3.bf16.msra.mxu1 %v3124_v48 }
 0x38e   :  { %3007 = vmatprep.subr.bf16.mxu1 %v3476_v17 }
 0x391   :  { %3008 = vmatpush3.bf16.msra.mxu1 %v3125_v49 }
 0x392   :  { %3009 = vmatprep.subr.bf16.mxu1 %v3476_v17 }
 0x395   :  { %3010 = vmatpush3.bf16.msra.mxu1 %v3126_v50 }
 0x396   :  { %967 = vmatprep.subr.bf16.mxu1 %v3129_v31 }
 0x44b   :  { %v510_v55 = vpop.f32.mrb[4].mxu1 }
 0x44c   :  { %v519_v56 = vrot.slane %v510_v55, %v3615_v53  ;;  %v2993_v57 = vpop.f32.mrb[5].mxu1  ;;  %v524_v60 = vrot.slane %v510_v55, %v3618_v54  ;;  %v742_v55 = vld [vmem:[#allocation7 + $0x80] ss:$0 sm:$0xff] }
 0x44d   :  { %v513_v58 = vpop.f32.mrb[6].mxu1 }
 0x44e   :  { %v520_v59 = vmul.f32 %v519_v56, %v3583_v62  ;;  %v2994_v61 = vpop.f32.mrb[7].mxu1 }
 0x450   :  { %v525_v63 = vadd.f32 %v524_v60, %v520_v59  ;;  %v744_v59 = vld [vmem:[#allocation7 + $0x84] ss:$0 sm:$0xff] }
 0x452   :  { %v542_v0 = vpack.c.bf16 %v525_v63, %v525_v63 }
 0x454   :  { %3012 = vmatmul.mubr.bf16.vlgmr.msra.gmra.mrb[8].mxu1 %v542_v0 }
 0x455   :  { %999 = vmatprep.mubr.bf16.mxu1 %v3469_v3  ;;  %968 = vmatpush1.bf16.msra.mxu1 %v3127_v30 }
 0x456   :  { %969 = vmatprep.subr.bf16.mxu1 %v3132_v32 }
 0x459   :  { %970 = vmatpush1.bf16.msra.mxu1 %v3130_v33 }
 0x45a   :  { %971 = vmatprep.subr.bf16.mxu1 %v3135_v34 }
 0x45d   :  { %972 = vmatpush1.bf16.msra.mxu1 %v3133_v35 }
 0x45e   :  { %973 = vmatprep.subr.bf16.mxu1 %v3138_v36 }
 0x461   :  { %974 = vmatpush1.bf16.msra.mxu1 %v3136_v37 }
 0x462   :  { %975 = vmatprep.subr.bf16.mxu1 %v3141_v38 }
 0x465   :  { %976 = vmatpush1.bf16.msra.mxu1 %v3139_v39 }
 0x466   :  { %977 = vmatprep.subr.bf16.mxu1 %v3144_v40 }
 0x469   :  { %978 = vmatpush1.bf16.msra.mxu1 %v3142_v41 }
 0x527   :  { %v626_v4 = vpop.f32.mrb[8].mxu1 }
 0x528   :  { %v627_v5 = vadd.f32 %v626_v4, %v543_v2  ;;  %v3013_v6 = vpop.f32.mrb[9].mxu1 }
 0x529   :  { %v629_v62 = vpop.f32.mrb[10].mxu1  ;;  %v3147_v6 = vld [vmem:[#allocation2 + $0x98] ss:$12 sps:$4 sm:$0xff]  }
 0x52a   :  { %v632_v7 = vmul.f32 0.01, %v627_v5  ;;  %v3014_v8 = vpop.f32.mrb[11].mxu1  ;;  %v3145_v62 = vld [vmem:[#allocation2 + $0x94] ss:$12 sps:$4 sm:$0xff]   ;;  %979 = vmatprep.subr.bf16.mxu1 %v3147_v6 }
 0x52b   :  { %980 = vmatpush1.bf16.msra.mxu1 %v3145_v62  ;;  %v3148_v8 = vld [vmem:[#allocation2 + $0xac] ss:$12 sps:$4 sm:$0xff]  }
 0x52c   :  { %v3628_v9 = vmax.f32 %v627_v5, %v632_v7  ;;  %v3150_v7 = vld [vmem:[#allocation2 + $0xb0] ss:$12 sps:$4 sm:$0xff]  }
 0x52d   :  { %981 = vmatprep.subr.bf16.mxu1 %v3150_v7 }
 0x52e   :  { %v635_v10 = vrot.slane %v3628_v9, 4  ;;  %v641_v11 = vmul.f32 %v3628_v9, %v3628_v9 }
 0x52f   :  { %982 = vmatpush1.bf16.msra.mxu1 %v3148_v8 }
 0x530   :  { %v636_v12 = vadd.f32 %v635_v10, %v3628_v9  ;;  %v642_v13 = vrot.slane %v641_v11, 4 }
 0x532   :  { %v637_v14 = vrot.slane %v636_v12, 2  ;;  %v643_v15 = vadd.f32 %v642_v13, %v641_v11 }
 0x534   :  { %v638_v16 = vadd.f32 %v637_v14, %v636_v12  ;;  %v644_v18 = vrot.slane %v643_v15, 2 }
 0x536   :  { %v639_v19 = vrot.slane %v638_v16, 1  ;;  %v645_v20 = vadd.f32 %v644_v18, %v643_v15 }
 0x538   :  { %v646_v21 = vrot.slane %v645_v20, 1  ;;  %v640_v22 = vadd.f32 %v639_v19, %v638_v16  ;;  %v1012_v19 = vld [vmem:[%s3806_s4 + $0x8] sm:$0xff] }
 0x53a   :  { %v647_v23 = vadd.f32 %v646_v21, %v645_v20  ;;  %v3653_v20 = vcombine.high %v1012_v19, %v1012_v19  ;;  %v2786_v21 = vcombine.low %v1012_v19, %v1012_v19 }
 0x53c   :  { %v648_v24 = vsel %vm315_vm2, %v640_v22, %v647_v23  ;;  %v875_v22 = vld [vmem:[#allocation7 + $0x65] ss:$8 sm:$0x3] }
 0x53d   :  { %v649_v25 = vpack.c.bf16 %v648_v24, %v648_v24  ;;  %v884_v23 = vrot.slane %v875_v22, %v3618_v54 }
 0x53f   :  { %v650_v26 = vunpack.c.l.bf16 %v649_v25 }
 0x541   :  { %v651_v27 = vsub.f32 %v648_v24, %v650_v26 }
 0x543   :  { %v652_v28 = vpack.c.bf16 %v651_v27, %v651_v27 }
 0x545   :  { %3018 = vmatmul.mubr.bf16.vlgmr.msra.gmra.mrb[8].mxu0 %v652_v28 }
 0x546   :  { %3022 = vmatpush3.bf16.xpose.msra.mxu0 %v634_v1  ;;  %3023 = vmatprep.mubr.msk.bf16.mxu0 %vm3477_vm0, %v3476_v17 }
 0x547   :  { %3027 = vmatprep.subr.bf16.mxu0 %v3476_v17 }
 0x551   :  { %3024 = vmatmul.mubr.bf16.vlgmr.msra.gmra.mrb[8].mxu0 %v649_v25 }
 0x552   :  { %3029 = vmatprep.mubr.msk.bf16.mxu0 %vm3477_vm0, %v3476_v17  ;;  %3028 = vmatpush3.bf16.msra.mxu0 %v762_v29 }
 0x553   :  { %3033 = vmatprep.subr.bf16.mxu0 %v3476_v17 }
 0x624   :  { %v727_v42 = vpop.f32.mrb[8].mxu0 }
 0x625   :  { %v733_v43 = vmul.f32 0.011363637, %v727_v42  ;;  %v3025_v44 = vpop.f32.mrb[9].mxu0 }
 0x626   :  { %v730_v45 = vpop.f32.mrb[10].mxu0 }
 0x627   :  { %v734_v46 = vmul.f32 %v733_v43, %v733_v43  ;;  %v3026_v47 = vpop.f32.mrb[11].mxu0 }
 0x629   :  { %v736_v48 = vrot.slane %v734_v46, 7 }
 0x62b   :  { %v738_v49 = vsub.f32 %v733_v43, %v736_v48 }
 0x62d   :  { %v739_v50 = vmax.f32 %v738_v49, 0.0 }
 0x62f   :  { %v740_v51 = vadd.f32 1e-05, %v739_v50 }
 0x631   :  { %3351 = vrsqrt.f32 %v740_v51 }
 0x63b   :  { %v3352_v56 = vpop.eup %3351 }
 0x63c   :  { %v743_v57 = vmul.f32 %v3352_v56, %v742_v55 }
 0x63e   :  { %v746_v58 = vrot.slane %v743_v57, 1 }
 0x640   :  { %v748_v60 = vmul.f32 %v746_v58, %v733_v43 }
 0x642   :  { %v749_v61 = vsub.f32 %v744_v59, %v748_v60 }
 0x644   :  { %v751_v63 = vrot.slane %v749_v61, 7 }
 0x646   :  { %v753_v0 = vsel %vm315_vm2, %v746_v58, %v751_v63 }
 0x647   :  { %v754_v1 = vpack.c.bf16 %v753_v0, %v753_v0 }
 0x649   :  { %v755_v2 = vunpack.c.l.bf16 %v754_v1 }
 0x64b   :  { %v756_v4 = vsub.f32 %v753_v0, %v755_v2 }
 0x64d   :  { %v757_v5 = vpack.c.bf16 %v756_v4, %v756_v4 }
 0x64f   :  { %3030 = vmatmul.mubr.msk.bf16.vlgmr.msra.gmra.mrb[12].mxu0 %vm151_vm1, %v757_v5 }
 0x650   :  { %3034 = vmatpush3.bf16.msra.mxu0 %v762_v29  ;;  %3035 = vmatprep.mubr.msk.bf16.mxu0 %vm3477_vm0, %v3476_v17 }
 0x651   :  { %1056 = vmatprep.subr.bf16.mxu0 %v3653_v20 }
 0x65b   :  { %3036 = vmatmul.mubr.msk.bf16.vlgmr.msra.gmra.mrb[12].mxu0 %vm151_vm1, %v754_v1 }
 0x65c   :  { %1057 = vmatpush1.bf16.xpose.msra.mxu0 %v2786_v21 }
 0x65d   :  { %1096 = vmatprep.subr.bf16.mxu0 %v3653_v20 }
 0x72e   :  { %v841_v10 = vpop.f32.mrb[12].mxu0 }
 0x72f   :  { %v850_v11 = vrot.slane %v841_v10, %v3615_v53  ;;  %v3037_v12 = vpop.f32.mrb[13].mxu0  ;;  %v855_v15 = vrot.slane %v841_v10, %v3618_v54 }
 0x730   :  { %v844_v13 = vpop.f32.mrb[14].mxu0 }
 0x731   :  { %v851_v14 = vmul.f32 %v850_v11, %v3628_v9  ;;  %v3038_v17 = vpop.f32.mrb[15].mxu0  ;;  %v880_v9 = vrot.slane %v875_v22, %v3615_v53  ;;  %v1165_v11 = vsel %vm429_vm3, %v2786_v21, 0 }
 0x733   :  { %v856_v16 = vadd.f32 %v855_v15, %v851_v14 }
 0x735   :  { %v873_v18 = vpack.c.bf16 %v856_v16, %v856_v16 }
 0x737   :  { %1000 = vmatmul.mubr.bf16.vlgmr.msra.gmra.mrb[12].mxu1 %v873_v18 }
 0x80a   :  { %v1001_v24 = vpop.f32.mrb[12].mxu1 }
 0x80b   :  { %v1002_v25 = vadd.f32 %v1001_v24, %v880_v9  ;;  %v1003_v26 = vpop.f32.mrb[13].mxu1 }
 0x80c   :  { %v1004_v27 = vadd.f32 %v1003_v26, %v884_v23  ;;  %v1005_v28 = vpop.f32.mrb[14].mxu1  ;;  %v1145_v23 = vld [vmem:[#allocation7 + $0x81] ss:$0 sm:$0xff] }
 0x80d   :  { %v1008_v29 = vmul.f32 0.01, %v1002_v25  ;;  %v1006_v30 = vpop.f32.mrb[15].mxu1 }
 0x80e   :  { %v1009_v31 = vmul.f32 0.01, %v1004_v27 }
 0x80f   :  { %v3659_v32 = vmax.f32 %v1002_v25, %v1008_v29 }
 0x810   :  { %v3661_v33 = vmax.f32 %v1004_v27, %v1009_v31 }
 0x811   :  { %v1013_v34 = vrot.slane %v3659_v32, 4  ;;  %v1025_v35 = vmul.f32 %v3659_v32, %v3659_v32 }
 0x812   :  { %v1019_v36 = vrot.slane %v3661_v33, 4  ;;  %v1026_v37 = vmul.f32 %v3661_v33, %v3661_v33 }
 0x813   :  { %v1014_v38 = vadd.f32 %v1013_v34, %v3659_v32  ;;  %v1027_v39 = vrot.slane %v1025_v35, 4 }
 0x814   :  { %v1020_v40 = vadd.f32 %v1019_v36, %v3661_v33  ;;  %v1033_v41 = vrot.slane %v1026_v37, 4  ;;  %v3155_v36 = vld [vmem:[#allocation4 + $0x4] ss:$16 sps:$4 sm:$0xff]  }
 0x815   :  { %v1015_v42 = vrot.slane %v1014_v38, 2  ;;  %v1028_v43 = vadd.f32 %v1027_v39, %v1025_v35  ;;  %v3156_v39 = vld [vmem:[#allocation4 + $0x20] ss:$16 sps:$4 sm:$0xff]  }
 0x816   :  { %v1021_v44 = vrot.slane %v1020_v40, 2  ;;  %v1034_v45 = vadd.f32 %v1033_v41, %v1026_v37  ;;  %v3153_v37 = vld [vmem:[#allocation4] ss:$16 sps:$4 sm:$0xff]  }
 0x817   :  { %v1016_v46 = vadd.f32 %v1015_v42, %v1014_v38  ;;  %v1029_v47 = vrot.slane %v1028_v43, 2  ;;  %v3158_v38 = vld [vmem:[#allocation4 + $0x24] ss:$16 sps:$4 sm:$0xff]   ;;  %v3159_v41 = vld [vmem:[#allocation4 + $0x40] ss:$16 sps:$4 sm:$0xff]  }
 0x818   :  { %v1022_v48 = vadd.f32 %v1021_v44, %v1020_v40  ;;  %v1035_v49 = vrot.slane %v1034_v45, 2  ;;  %v3161_v40 = vld [vmem:[#allocation4 + $0x44] ss:$16 sps:$4 sm:$0xff]  }
 0x819   :  { %v1017_v50 = vrot.slane %v1016_v46, 1  ;;  %v1030_v51 = vadd.f32 %v1029_v47, %v1028_v43  ;;  %v3164_v42 = vld [vmem:[#allocation4 + $0x64] ss:$16 sps:$4 sm:$0xff]   ;;  %v3162_v43 = vld [vmem:[#allocation4 + $0x60] ss:$16 sps:$4 sm:$0xff]  }
 0x81a   :  { %v1023_v55 = vrot.slane %v1022_v48, 1  ;;  %v1036_v56 = vadd.f32 %v1035_v49, %v1034_v45  ;;  %v3167_v44 = vld [vmem:[#allocation4 + $0x84] ss:$16 sps:$4 sm:$0xff]   ;;  %v3165_v45 = vld [vmem:[#allocation4 + $0x80] ss:$16 sps:$4 sm:$0xff]  }
 0x81b   :  { %v1031_v57 = vrot.slane %v1030_v51, 1  ;;  %v1018_v59 = vadd.f32 %v1017_v50, %v1016_v46  ;;  %v3170_v46 = vld [vmem:[#allocation4 + $0xa4] ss:$16 sps:$4 sm:$0xff]   ;;  %v3168_v47 = vld [vmem:[#allocation4 + $0xa0] ss:$16 sps:$4 sm:$0xff]  }
 0x81c   :  { %v1037_v58 = vrot.slane %v1036_v56, 1  ;;  %v1024_v61 = vadd.f32 %v1023_v55, %v1022_v48  ;;  %v3173_v48 = vld [vmem:[#allocation4 + $0xc4] ss:$16 sps:$4 sm:$0xff]   ;;  %v3171_v49 = vld [vmem:[#allocation4 + $0xc0] ss:$16 sps:$4 sm:$0xff]  }
 0x81d   :  { %v1032_v60 = vadd.f32 %v1031_v57, %v1030_v51  ;;  %v3176_v50 = vld [vmem:[#allocation4 + $0xe4] ss:$16 sps:$4 sm:$0xff]   ;;  %v3174_v51 = vld [vmem:[#allocation4 + $0xe0] ss:$16 sps:$4 sm:$0xff]  }
 0x81e   :  { %v1038_v63 = vadd.f32 %v1037_v58, %v1036_v56  ;;  %v3179_v55 = vld [vmem:[#allocation4 + $0x104] ss:$16 sps:$4 sm:$0xff]   ;;  %v3177_v56 = vld [vmem:[#allocation4 + $0x100] ss:$16 sps:$4 sm:$0xff]  }
 0x81f   :  { %v1039_v0 = vsel %vm315_vm2, %v1018_v59, %v1032_v60  ;;  %v3182_v57 = vld [vmem:[#allocation4 + $0x124] ss:$16 sps:$4 sm:$0xff]   ;;  %v3180_v58 = vld [vmem:[#allocation4 + $0x120] ss:$16 sps:$4 sm:$0xff]  }
 0x820   :  { %v1040_v1 = vsel %vm315_vm2, %v1024_v61, %v1038_v63  ;;  %v1041_v2 = vpack.c.bf16 %v1039_v0, %v1039_v0  ;;  %v3185_v59 = vld [vmem:[#allocation4 + $0x144] ss:$16 sps:$4 sm:$0xff]   ;;  %v3183_v60 = vld [vmem:[#allocation4 + $0x140] ss:$16 sps:$4 sm:$0xff]  }
 0x821   :  { %v1042_v4 = vpack.c.bf16 %v1040_v1, %v1040_v1  ;;  %v3188_v61 = vld [vmem:[#allocation4 + $0x164] ss:$16 sps:$4 sm:$0xff]   ;;  %v3186_v63 = vld [vmem:[#allocation4 + $0x160] ss:$16 sps:$4 sm:$0xff]  }
 0x822   :  { %v1043_v5 = vunpack.c.l.bf16 %v1041_v2 }
 0x823   :  { %v1044_v6 = vunpack.c.l.bf16 %v1042_v4 }
 0x824   :  { %v1045_v62 = vsub.f32 %v1039_v0, %v1043_v5  ;;  %v3191_v0 = vld [vmem:[#allocation4 + $0x184] ss:$16 sps:$4 sm:$0xff]  }
 0x825   :  { %v1046_v7 = vsub.f32 %v1040_v1, %v1044_v6  ;;  %v3189_v1 = vld [vmem:[#allocation4 + $0x180] ss:$16 sps:$4 sm:$0xff]   ;;  %v3197_v5 = vld [vmem:[#allocation4 + $0x1c4] ss:$16 sps:$4 sm:$0xff]  }
 0x826   :  { %v1047_v10 = vpack.c.bf16 %v1045_v62, %v1045_v62  ;;  %v3195_v6 = vld [vmem:[#allocation4 + $0x1c0] ss:$16 sps:$4 sm:$0xff]   ;;  %v3200_v62 = vld [vmem:[#allocation4 + $0x1e4] ss:$16 sps:$4 sm:$0xff]  }
 0x827   :  { %v1048_v8 = vpack.c.bf16 %v1046_v7, %v1046_v7  ;;  %v3198_v7 = vld [vmem:[#allocation4 + $0x1e0] ss:$16 sps:$4 sm:$0xff]  }
 0x829   :  { %1088 = vmatprep.mubr.bf16.mxu0 %v1048_v8  ;;  %v3203_v8 = vld [vmem:[#allocation4 + $0xc] ss:$16 sps:$4 sm:$0xff]  }
 0x82a   :  { %1089 = vmatmul.mubr.bf16.vlgmr.msra.gmra.mrb[16].mxu0 %v1047_v10 }
 0x82b   :  { %1097 = vmatpush1.bf16.xpose.msra.mxu0 %v2786_v21  ;;  %1128 = vmatprep.mubr.bf16.mxu0 %v1042_v4  ;;  %v1147_v21 = vld [vmem:[#allocation7 + $0x85] ss:$0 sm:$0xff]  ;;  %v3192_v4 = vld [vmem:[#allocation4 + $0x1a0] ss:$16 sps:$4 sm:$0xff]  }
 0x82c   :  { %2788 = vmatprep.subr.msk.bf16.mxu0 %vm429_vm3, %v3653_v20 }
 0x836   :  { %1129 = vmatmul.mubr.bf16.vlgmr.msra.gmra.mrb[16].mxu0 %v1041_v2  ;;  %v3194_v2 = vld [vmem:[#allocation4 + $0x1a4] ss:$16 sps:$4 sm:$0xff]  }
 0x837   :  { %1202 = vmatprep.mubr.bf16.mxu0 %v3469_v3  ;;  %1171 = vmatpush1.bf16.msra.mxu0 %v1165_v11 }
 0x838   :  { %2790 = vmatprep.subr.msk.bf16.mxu0 %vm429_vm3, %v3653_v20 }
 0x909   :  { %v1130_v12 = vpop.f32.mrb[16].mxu0 }
 0x90a   :  { %v1136_v13 = vmul.f32 0.005, %v1130_v12  ;;  %v1132_v14 = vpop.f32.mrb[17].mxu0 }
 0x90b   :  { %v1133_v15 = vpop.f32.mrb[18].mxu0 }
 0x90c   :  { %v1137_v17 = vmul.f32 %v1136_v13, %v1136_v13  ;;  %v1134_v16 = vpop.f32.mrb[19].mxu0 }
 0x90e   :  { %v1139_v18 = vrot.slane %v1137_v17, 7 }
 0x910   :  { %v1141_v19 = vsub.f32 %v1136_v13, %v1139_v18 }
 0x912   :  { %v1142_v22 = vmax.f32 %v1141_v19, 0.0 }
 0x914   :  { %v1143_v9 = vadd.f32 1e-05, %v1142_v22 }
 0x916   :  { %3353 = vrsqrt.f32 %v1143_v9 }
 0x920   :  { %v3354_v24 = vpop.eup %3353 }
 0x921   :  { %v1146_v25 = vmul.f32 %v3354_v24, %v1145_v23  ;;  %v3201_v24 = vld [vmem:[#allocation4 + $0x8] ss:$16 sps:$4 sm:$0xff]  }
 0x923   :  { %v1149_v26 = vrot.slane %v1146_v25, 1 }
 0x925   :  { %v1151_v27 = vmul.f32 %v1149_v26, %v1136_v13 }
 0x927   :  { %v1152_v28 = vsub.f32 %v1147_v21, %v1151_v27  ;;  %v3209_v21 = vld [vmem:[#allocation4 + $0x4c] ss:$16 sps:$4 sm:$0xff]   ;;  %v3207_v27 = vld [vmem:[#allocation4 + $0x48] ss:$16 sps:$4 sm:$0xff]  }
 0x929   :  { %v1154_v29 = vrot.slane %v1152_v28, 7  ;;  %v3210_v28 = vld [vmem:[#allocation4 + $0x68] ss:$16 sps:$4 sm:$0xff]  }
 0x92b   :  { %v1156_v20 = vsel %vm315_vm2, %v1149_v26, %v1154_v29  ;;  %v3206_v26 = vld [vmem:[#allocation4 + $0x2c] ss:$16 sps:$4 sm:$0xff]  }
 0x92c   :  { %v1157_v30 = vpack.c.bf16 %v1156_v20, %v1156_v20  ;;  %v3215_v29 = vld [vmem:[#allocation4 + $0x8c] ss:$16 sps:$4 sm:$0xff]  }
 0x92e   :  { %v1158_v31 = vunpack.c.l.bf16 %v1157_v30 }
 0x930   :  { %v1159_v34 = vsub.f32 %v1156_v20, %v1158_v31  ;;  %v3213_v20 = vld [vmem:[#allocation4 + $0x88] ss:$16 sps:$4 sm:$0xff]  }
 0x931   :  { %v3216_v31 = vld [vmem:[#allocation4 + $0xa8] ss:$16 sps:$4 sm:$0xff]  }
 0x932   :  { %v1160_v35 = vpack.c.bf16 %v1159_v34, %v1159_v34  ;;  %v3221_v34 = vld [vmem:[#allocation4 + $0xcc] ss:$16 sps:$4 sm:$0xff]  }
 0x934   :  { %2789 = vmatmul.mubr.msk.bf16.vlgmr.msra.gmra.mrb[20].mxu0 %vm151_vm1, %v1160_v35  ;;  %v3219_v35 = vld [vmem:[#allocation4 + $0xc8] ss:$16 sps:$4 sm:$0xff]  }
 0x935   :  { %1215 = vmatpush1.bf16.msra.mxu0 %v1165_v11  ;;  %1246 = vmatprep.mubr.bf16.mxu0 %v3469_v3 }
 0x936   :  { %1684 = vmatprep.subr.bf16.mxu0 %v3155_v36  ;;  %v3224_v36 = vld [vmem:[#allocation4 + $0xec] ss:$16 sps:$4 sm:$0xff]  }
 0x940   :  { %2791 = vmatmul.mubr.msk.bf16.vlgmr.msra.gmra.mrb[20].mxu0 %vm151_vm1, %v1157_v30  ;;  %v3218_v30 = vld [vmem:[#allocation4 + $0xac] ss:$16 sps:$4 sm:$0xff]  }
 0x941   :  { %1685 = vmatpush1.bf16.msra.mxu0 %v3153_v37  ;;  %v3222_v37 = vld [vmem:[#allocation4 + $0xe8] ss:$16 sps:$4 sm:$0xff]  }
 0x942   :  { %1686 = vmatprep.subr.bf16.mxu0 %v3158_v38  ;;  %v3227_v38 = vld [vmem:[#allocation4 + $0x10c] ss:$16 sps:$4 sm:$0xff]  }
 0x945   :  { %1687 = vmatpush1.bf16.msra.mxu0 %v3156_v39  ;;  %v3225_v39 = vld [vmem:[#allocation4 + $0x108] ss:$16 sps:$4 sm:$0xff]  }
 0x946   :  { %1688 = vmatprep.subr.bf16.mxu0 %v3161_v40  ;;  %v3230_v40 = vld [vmem:[#allocation4 + $0x12c] ss:$16 sps:$4 sm:$0xff]  }
 0x949   :  { %1689 = vmatpush1.bf16.msra.mxu0 %v3159_v41  ;;  %v3228_v41 = vld [vmem:[#allocation4 + $0x128] ss:$16 sps:$4 sm:$0xff]  }
 0x94a   :  { %1690 = vmatprep.subr.bf16.mxu0 %v3164_v42  ;;  %v3233_v42 = vld [vmem:[#allocation4 + $0x14c] ss:$16 sps:$4 sm:$0xff]  }
 0x94d   :  { %1691 = vmatpush1.bf16.msra.mxu0 %v3162_v43  ;;  %v3231_v43 = vld [vmem:[#allocation4 + $0x148] ss:$16 sps:$4 sm:$0xff]  }
 0x94e   :  { %1692 = vmatprep.subr.bf16.mxu0 %v3167_v44  ;;  %v3236_v44 = vld [vmem:[#allocation4 + $0x16c] ss:$16 sps:$4 sm:$0xff]  }
 0x951   :  { %1693 = vmatpush1.bf16.msra.mxu0 %v3165_v45  ;;  %v3234_v45 = vld [vmem:[#allocation4 + $0x168] ss:$16 sps:$4 sm:$0xff]  }
 0x952   :  { %1694 = vmatprep.subr.bf16.mxu0 %v3170_v46  ;;  %v3239_v46 = vld [vmem:[#allocation4 + $0x18c] ss:$16 sps:$4 sm:$0xff]  }
 0x955   :  { %1695 = vmatpush1.bf16.msra.mxu0 %v3168_v47  ;;  %v3237_v47 = vld [vmem:[#allocation4 + $0x188] ss:$16 sps:$4 sm:$0xff]  }
 0x956   :  { %1696 = vmatprep.subr.bf16.mxu0 %v3173_v48  ;;  %v3242_v48 = vld [vmem:[#allocation4 + $0x1ac] ss:$16 sps:$4 sm:$0xff]  }
 0x959   :  { %1697 = vmatpush1.bf16.msra.mxu0 %v3171_v49  ;;  %v3240_v49 = vld [vmem:[#allocation4 + $0x1a8] ss:$16 sps:$4 sm:$0xff]  }
 0x95a   :  { %1698 = vmatprep.subr.bf16.mxu0 %v3176_v50  ;;  %v3245_v50 = vld [vmem:[#allocation4 + $0x1cc] ss:$16 sps:$4 sm:$0xff]  }
 0x95d   :  { %1699 = vmatpush1.bf16.msra.mxu0 %v3174_v51  ;;  %v3243_v51 = vld [vmem:[#allocation4 + $0x1c8] ss:$16 sps:$4 sm:$0xff]  }
 0x95e   :  { %1700 = vmatprep.subr.bf16.mxu0 %v3179_v55  ;;  %v3248_v55 = vld [vmem:[#allocation4 + $0x1ec] ss:$16 sps:$4 sm:$0xff]  }
 0x961   :  { %1701 = vmatpush1.bf16.msra.mxu0 %v3177_v56  ;;  %v3246_v56 = vld [vmem:[#allocation4 + $0x1e8] ss:$16 sps:$4 sm:$0xff]  }
 0x962   :  { %1702 = vmatprep.subr.bf16.mxu0 %v3182_v57  ;;  %v1774_v57 = vld [vmem:[%s3806_s4 + $0x10] sm:$0xff] }
 0x965   :  { %1703 = vmatpush1.bf16.msra.mxu0 %v3180_v58  ;;  %v3697_v58 = vcombine.high %v1774_v57, %v1774_v57 }
 0x966   :  { %1704 = vmatprep.subr.bf16.mxu0 %v3185_v59  ;;  %v3699_v59 = vcombine.low %v1774_v57, %v1774_v57 }
 0x967   :  { %1862 = vmatprep.subr.bf16.mxu1 %v3697_v58 }
 0x968   :  { %1863 = vmatpush1.bf16.xpose.msra.mxu1 %v3699_v59 }
 0x969   :  { %1705 = vmatpush1.bf16.msra.mxu0 %v3183_v60  ;;  %v1775_v60 = vld [vmem:[%s3806_s4 + $0x18] sm:$0xff] }
 0x96a   :  { %1706 = vmatprep.subr.bf16.mxu0 %v3188_v61  ;;  %v3708_v61 = vcombine.high %v1775_v60, %v1775_v60 }
 0x96c   :  { %1902 = vmatprep.subr.bf16.mxu1 %v3708_v61 }
 0x96d   :  { %1707 = vmatpush1.bf16.msra.mxu0 %v3186_v63  ;;  %v1342_v63 = vld [vmem:[#allocation7 + $0x66] ss:$8 sm:$0xf] }
 0x96e   :  { %1708 = vmatprep.subr.bf16.mxu0 %v3191_v0  ;;  %v1347_v0 = vrot.slane %v1342_v63, %v3615_v53 }
 0x971   :  { %1709 = vmatpush1.bf16.msra.mxu0 %v3189_v1  ;;  %v1351_v1 = vrot.slane %v1342_v63, %v3618_v54 }
 0x972   :  { %1710 = vmatprep.subr.bf16.mxu0 %v3194_v2 }
 0x975   :  { %1711 = vmatpush1.bf16.msra.mxu0 %v3192_v4 }
 0x976   :  { %1712 = vmatprep.subr.bf16.mxu0 %v3197_v5 }
 0x979   :  { %1713 = vmatpush1.bf16.msra.mxu0 %v3195_v6 }
 0x97a   :  { %1714 = vmatprep.subr.bf16.mxu0 %v3200_v62 }
 0x97d   :  { %1715 = vmatpush1.bf16.msra.mxu0 %v3198_v7 }
 0x97e   :  { %1725 = vmatprep.subr.bf16.mxu0 %v3203_v8 }
 0xa13   :  { %v1248_v10 = vpop.f32.mrb[20].mxu0 }
 0xa14   :  { %v1258_v11 = vrot.slane %v1248_v10, %v3615_v53  ;;  %v1250_v12 = vpop.f32.mrb[21].mxu0  ;;  %v1268_v17 = vrot.slane %v1248_v10, %v3618_v54 }
 0xa15   :  { %v1262_v13 = vrot.slane %v1250_v12, %v3615_v53  ;;  %v1252_v14 = vpop.f32.mrb[22].mxu0  ;;  %v1272_v19 = vrot.slane %v1250_v12, %v3618_v54 }
 0xa16   :  { %v1263_v15 = vmul.f32 %v1258_v11, %v3659_v32  ;;  %v1253_v16 = vpop.f32.mrb[23].mxu0  ;;  %v3204_v32 = vld [vmem:[#allocation4 + $0x28] ss:$16 sps:$4 sm:$0xff]  }
 0xa17   :  { %v1264_v18 = vmul.f32 %v1262_v13, %v3661_v33  ;;  %v3212_v33 = vld [vmem:[#allocation4 + $0x6c] ss:$16 sps:$4 sm:$0xff]  }
 0xa18   :  { %v1273_v22 = vadd.f32 %v1268_v17, %v1263_v15 }
 0xa19   :  { %v1274_v9 = vadd.f32 %v1272_v19, %v1264_v18 }
 0xa1a   :  { %v3689_v25 = vpack.c.bf16 %v1273_v22, %v1273_v22 }
 0xa1b   :  { %v1340_v23 = vpack.c.bf16 %v1274_v9, %v1274_v9 }
 0xa1d   :  { %1716 = vmatprep.mubr.bf16.mxu0 %v1340_v23 }
 0xa1e   :  { %1717 = vmatmul.mubr.bf16.vlgmr.msra.gmra.mrb[24].mxu0 %v3689_v25 }
 0xa1f   :  { %1726 = vmatpush1.bf16.msra.mxu0 %v3201_v24  ;;  %1757 = vmatprep.mubr.bf16.mxu0 %v1340_v23 }
 0xa20   :  { %1727 = vmatprep.subr.bf16.mxu0 %v3206_v26 }
 0xa23   :  { %1728 = vmatpush1.bf16.msra.mxu0 %v3204_v32 }
 0xa24   :  { %1729 = vmatprep.subr.bf16.mxu0 %v3209_v21 }
 0xa27   :  { %1730 = vmatpush1.bf16.msra.mxu0 %v3207_v27 }
 0xa28   :  { %1731 = vmatprep.subr.bf16.mxu0 %v3212_v33 }
 0xa2b   :  { %1732 = vmatpush1.bf16.msra.mxu0 %v3210_v28 }
 0xa2c   :  { %1733 = vmatprep.subr.bf16.mxu0 %v3215_v29 }
 0xa2f   :  { %1734 = vmatpush1.bf16.msra.mxu0 %v3213_v20 }
 0xa30   :  { %1735 = vmatprep.subr.bf16.mxu0 %v3218_v30 }
 0xa33   :  { %1736 = vmatpush1.bf16.msra.mxu0 %v3216_v31 }
 0xa34   :  { %1737 = vmatprep.subr.bf16.mxu0 %v3221_v34 }
 0xa37   :  { %1738 = vmatpush1.bf16.msra.mxu0 %v3219_v35 }
 0xa38   :  { %1739 = vmatprep.subr.bf16.mxu0 %v3224_v36 }
 0xa3b   :  { %1740 = vmatpush1.bf16.msra.mxu0 %v3222_v37 }
 0xa3c   :  { %1741 = vmatprep.subr.bf16.mxu0 %v3227_v38 }
 0xa3f   :  { %1742 = vmatpush1.bf16.msra.mxu0 %v3225_v39 }
 0xa40   :  { %1743 = vmatprep.subr.bf16.mxu0 %v3230_v40 }
 0xa43   :  { %1744 = vmatpush1.bf16.msra.mxu0 %v3228_v41 }
 0xa44   :  { %1745 = vmatprep.subr.bf16.mxu0 %v3233_v42 }
 0xa47   :  { %1746 = vmatpush1.bf16.msra.mxu0 %v3231_v43 }
 0xa48   :  { %1747 = vmatprep.subr.bf16.mxu0 %v3236_v44 }
 0xa4b   :  { %1748 = vmatpush1.bf16.msra.mxu0 %v3234_v45 }
 0xa4c   :  { %1749 = vmatprep.subr.bf16.mxu0 %v3239_v46 }
 0xa4f   :  { %1750 = vmatpush1.bf16.msra.mxu0 %v3237_v47  ;;  %v3733_v47 = vcombine.low %v1775_v60, %v1775_v60 }
 0xa50   :  { %1751 = vmatprep.subr.bf16.mxu0 %v3242_v48 }
 0xa53   :  { %1752 = vmatpush1.bf16.msra.mxu0 %v3240_v49  ;;  %v1354_v49 = vsub.s32 2, %v3612_v52 }
 0xa54   :  { %1753 = vmatprep.subr.bf16.mxu0 %v3245_v50  ;;  %v1358_v50 = vsub.s32 3, %v3612_v52 }
 0xa57   :  { %1754 = vmatpush1.bf16.msra.mxu0 %v3243_v51  ;;  %v1355_v51 = vrot.slane %v1342_v63, %v1354_v49  ;;  %v3256_v49 = vld [vmem:[#allocation6 + $0x10] ss:$8 sps:$4 sm:$0xff]  }
 0xa58   :  { %1755 = vmatprep.subr.bf16.mxu0 %v3248_v55  ;;  %v1359_v55 = vrot.slane %v1342_v63, %v1358_v50  ;;  %v3259_v50 = vld [vmem:[#allocation6 + $0x20] ss:$8 sps:$4 sm:$0xff]  }
 0xa5b   :  { %1756 = vmatpush1.bf16.msra.mxu0 %v3246_v56 }
 0xa5c   :  { %2860 = vmatprep.subr.msk.bf16.mxu0 %vm429_vm3, %v3697_v58 }
 0xa5e   :  { %1758 = vmatmul.mubr.bf16.vlgmr.msra.gmra.mrb[28].mxu0 %v3689_v25 }
 0xa5f   :  { %2094 = vmatprep.mubr.bf16.mxu0 %v3469_v3 }
 0xaf1   :  { %v1718_v2 = vpop.f32.mrb[24].mxu0 }
 0xaf2   :  { %v1719_v4 = vadd.f32 %v1718_v2, %v1347_v0  ;;  %v1720_v5 = vpop.f32.mrb[25].mxu0 }
 0xaf3   :  { %v1721_v6 = vadd.f32 %v1720_v5, %v1351_v1  ;;  %v1722_v62 = vpop.f32.mrb[26].mxu0 }
 0xaf4   :  { %v1766_v7 = vmul.f32 0.01, %v1719_v4  ;;  %v1723_v8 = vpop.f32.mrb[27].mxu0 }
 0xaf5   :  { %v1767_v10 = vmul.f32 0.01, %v1721_v6 }
 0xaf6   :  { %v3713_v11 = vmax.f32 %v1719_v4, %v1766_v7 }
 0xaf7   :  { %v3715_v12 = vmax.f32 %v1721_v6, %v1767_v10 }
 0xaf8   :  { %v1776_v13 = vrot.slane %v3713_v11, 4  ;;  %v1800_v14 = vmul.f32 %v3713_v11, %v3713_v11 }
 0xaf9   :  { %v1782_v15 = vrot.slane %v3715_v12, 4  ;;  %v1801_v17 = vmul.f32 %v3715_v12, %v3715_v12 }
 0xafa   :  { %v1777_v16 = vadd.f32 %v1776_v13, %v3713_v11  ;;  %v1804_v18 = vrot.slane %v1800_v14, 4 }
 0xafb   :  { %v1783_v19 = vadd.f32 %v1782_v15, %v3715_v12  ;;  %v1810_v22 = vrot.slane %v1801_v17, 4 }
 0xafc   :  { %v1778_v9 = vrot.slane %v1777_v16, 2  ;;  %v1805_v23 = vadd.f32 %v1804_v18, %v1800_v14 }
 0xafd   :  { %v1784_v24 = vrot.slane %v1783_v19, 2  ;;  %v1811_v25 = vadd.f32 %v1810_v22, %v1801_v17 }
 0xafe   :  { %v1779_v26 = vadd.f32 %v1778_v9, %v1777_v16  ;;  %v1806_v32 = vrot.slane %v1805_v23, 2 }
 0xaff   :  { %v1785_v21 = vadd.f32 %v1784_v24, %v1783_v19  ;;  %v1812_v27 = vrot.slane %v1811_v25, 2 }
 0xb00   :  { %v1780_v33 = vrot.slane %v1779_v26, 1  ;;  %v1807_v28 = vadd.f32 %v1806_v32, %v1805_v23 }
 0xb01   :  { %v1786_v29 = vrot.slane %v1785_v21, 1  ;;  %v1813_v20 = vadd.f32 %v1812_v27, %v1811_v25 }
 0xb02   :  { %v1808_v30 = vrot.slane %v1807_v28, 1  ;;  %v1781_v34 = vadd.f32 %v1780_v33, %v1779_v26 }
 0xb03   :  { %v1814_v31 = vrot.slane %v1813_v20, 1  ;;  %v1787_v36 = vadd.f32 %v1786_v29, %v1785_v21 }
 0xb04   :  { %v1809_v35 = vadd.f32 %v1808_v30, %v1807_v28 }
 0xb05   :  { %v1815_v37 = vadd.f32 %v1814_v31, %v1813_v20 }
 0xb06   :  { %v1828_v38 = vsel %vm315_vm2, %v1781_v34, %v1809_v35 }
 0xb07   :  { %v1829_v39 = vsel %vm315_vm2, %v1787_v36, %v1815_v37  ;;  %v3727_v40 = vpack.c.bf16 %v1828_v38, %v1828_v38 }
 0xb08   :  { %v3729_v41 = vpack.c.bf16 %v1829_v39, %v1829_v39 }
 0xb09   :  { %v1836_v42 = vunpack.c.l.bf16 %v3727_v40 }
 0xb0a   :  { %v1837_v43 = vunpack.c.l.bf16 %v3729_v41 }
 0xb0b   :  { %v1840_v44 = vsub.f32 %v1828_v38, %v1836_v42 }
 0xb0c   :  { %v1841_v45 = vsub.f32 %v1829_v39, %v1837_v43 }
 0xb0d   :  { %v1844_v48 = vpack.c.bf16 %v1840_v44, %v1840_v44 }
 0xb0e   :  { %v1845_v46 = vpack.c.bf16 %v1841_v45, %v1841_v45  ;;  %v3760_v45 = vsel %vm429_vm3, %v3699_v59, 0 }
 0xb0f   :  { %2063 = vmatpush1.bf16.msra.mxu0 %v3760_v45 }
 0xb10   :  { %1894 = vmatprep.mubr.bf16.mxu1 %v1845_v46  ;;  %2862 = vmatprep.subr.msk.bf16.mxu0 %vm429_vm3, %v3708_v61  ;;  %v3253_v46 = vld [vmem:[#allocation6] ss:$8 sps:$4 sm:$0xff]  }
 0xb11   :  { %1895 = vmatmul.mubr.bf16.vlgmr.msra.gmra.mrb[16].mxu1 %v1844_v48  ;;  %v3255_v48 = vld [vmem:[#allocation6 + $0x4] ss:$8 sps:$4 sm:$0xff]  }
 0xb12   :  { %1903 = vmatpush1.bf16.xpose.msra.mxu1 %v3733_v47 }
 0xb13   :  { %1942 = vmatprep.subr.bf16.mxu1 %v3697_v58 }
 0xb31   :  { %v1759_v56 = vpop.f32.mrb[28].mxu0 }
 0xb32   :  { %v1760_v57 = vadd.f32 %v1759_v56, %v1355_v51  ;;  %v1761_v0 = vpop.f32.mrb[29].mxu0  ;;  %v3264_v51 = vld [vmem:[#allocation6 + $0x34] ss:$8 sps:$4 sm:$0xff]   ;;  %v3265_v56 = vld [vmem:[#allocation6 + $0x40] ss:$8 sps:$4 sm:$0xff]  }
 0xb33   :  { %v1762_v1 = vadd.f32 %v1761_v0, %v1359_v55  ;;  %v1763_v2 = vpop.f32.mrb[30].mxu0  ;;  %v3267_v55 = vld [vmem:[#allocation6 + $0x44] ss:$8 sps:$4 sm:$0xff]   ;;  %v3268_v0 = vld [vmem:[#allocation6 + $0x50] ss:$8 sps:$4 sm:$0xff]  }
 0xb34   :  { %v1768_v60 = vmul.f32 0.01, %v1760_v57  ;;  %v1764_v4 = vpop.f32.mrb[31].mxu0  ;;  %v3271_v2 = vld [vmem:[#allocation6 + $0x60] ss:$8 sps:$4 sm:$0xff]  }
 0xb35   :  { %v1769_v5 = vmul.f32 0.01, %v1762_v1  ;;  %v3274_v4 = vld [vmem:[#allocation6 + $0x70] ss:$8 sps:$4 sm:$0xff]  }
 0xb36   :  { %v3739_v6 = vmax.f32 %v1760_v57, %v1768_v60  ;;  %v3270_v57 = vld [vmem:[#allocation6 + $0x54] ss:$8 sps:$4 sm:$0xff]  }
 0xb37   :  { %v3741_v62 = vmax.f32 %v1762_v1, %v1769_v5  ;;  %v3273_v1 = vld [vmem:[#allocation6 + $0x64] ss:$8 sps:$4 sm:$0xff]   ;;  %v3276_v60 = vld [vmem:[#allocation6 + $0x74] ss:$8 sps:$4 sm:$0xff]  }
 0xb38   :  { %v1788_v7 = vrot.slane %v3739_v6, 4  ;;  %v1802_v8 = vmul.f32 %v3739_v6, %v3739_v6  ;;  %v3279_v5 = vld [vmem:[#allocation6 + $0x84] ss:$8 sps:$4 sm:$0xff]  }
 0xb39   :  { %v1794_v52 = vrot.slane %v3741_v62, 4  ;;  %v1803_v63 = vmul.f32 %v3741_v62, %v3741_v62 }
 0xb3a   :  { %v1789_v10 = vadd.f32 %v1788_v7, %v3739_v6  ;;  %v1816_v13 = vrot.slane %v1802_v8, 4  ;;  %v3277_v7 = vld [vmem:[#allocation6 + $0x80] ss:$8 sps:$4 sm:$0xff]  }
 0xb3b   :  { %v1795_v14 = vadd.f32 %v1794_v52, %v3741_v62  ;;  %v1822_v15 = vrot.slane %v1803_v63, 4  ;;  %v3280_v52 = vld [vmem:[#allocation6 + $0x90] ss:$8 sps:$4 sm:$0xff]  }
 0xb3c   :  { %v1790_v17 = vrot.slane %v1789_v10, 2  ;;  %v1817_v16 = vadd.f32 %v1816_v13, %v1802_v8  ;;  %v3282_v8 = vld [vmem:[#allocation6 + $0x94] ss:$8 sps:$4 sm:$0xff]  }
 0xb3d   :  { %v1796_v18 = vrot.slane %v1795_v14, 2  ;;  %v1823_v19 = vadd.f32 %v1822_v15, %v1803_v63  ;;  %v3285_v63 = vld [vmem:[#allocation6 + $0xa4] ss:$8 sps:$4 sm:$0xff]   ;;  %v3288_v13 = vld [vmem:[#allocation6 + $0xb4] ss:$8 sps:$4 sm:$0xff]  }
 0xb3e   :  { %v1791_v22 = vadd.f32 %v1790_v17, %v1789_v10  ;;  %v1818_v9 = vrot.slane %v1817_v16, 2  ;;  %v3283_v10 = vld [vmem:[#allocation6 + $0xa0] ss:$8 sps:$4 sm:$0xff]   ;;  %v3291_v15 = vld [vmem:[#allocation6 + $0xc4] ss:$8 sps:$4 sm:$0xff]  }
 0xb3f   :  { %v1797_v23 = vadd.f32 %v1796_v18, %v1795_v14  ;;  %v1824_v24 = vrot.slane %v1823_v19, 2  ;;  %v3286_v14 = vld [vmem:[#allocation6 + $0xb0] ss:$8 sps:$4 sm:$0xff]   ;;  %v3289_v17 = vld [vmem:[#allocation6 + $0xc0] ss:$8 sps:$4 sm:$0xff]  }
 0xb40   :  { %v1792_v25 = vrot.slane %v1791_v22, 1  ;;  %v1819_v26 = vadd.f32 %v1818_v9, %v1817_v16  ;;  %v3294_v16 = vld [vmem:[#allocation6 + $0xd4] ss:$8 sps:$4 sm:$0xff]   ;;  %v3292_v18 = vld [vmem:[#allocation6 + $0xd0] ss:$8 sps:$4 sm:$0xff]  }
 0xb41   :  { %v1798_v32 = vrot.slane %v1797_v23, 1  ;;  %v1825_v21 = vadd.f32 %v1824_v24, %v1823_v19 }
 0xb42   :  { %v1820_v27 = vrot.slane %v1819_v26, 1  ;;  %v1793_v28 = vadd.f32 %v1792_v25, %v1791_v22 }
 0xb43   :  { %v1826_v33 = vrot.slane %v1825_v21, 1  ;;  %v1799_v20 = vadd.f32 %v1798_v32, %v1797_v23 }
 0xb44   :  { %v1821_v29 = vadd.f32 %v1820_v27, %v1819_v26 }
 0xb45   :  { %v1827_v30 = vadd.f32 %v1826_v33, %v1825_v21  ;;  %v2031_v33 = vld [vmem:[#allocation7 + $0x82] ss:$0 sm:$0xff] }
 0xb46   :  { %v1830_v31 = vsel %vm315_vm2, %v1793_v28, %v1821_v29 }
 0xb47   :  { %v1831_v34 = vsel %vm315_vm2, %v1799_v20, %v1827_v30  ;;  %v1834_v35 = vpack.c.bf16 %v1830_v31, %v1830_v31  ;;  %v2033_v30 = vld [vmem:[#allocation7 + $0x86] ss:$0 sm:$0xff] }
 0xb48   :  { %v1835_v36 = vpack.c.bf16 %v1831_v34, %v1831_v34 }
 0xb49   :  { %v1838_v37 = vunpack.c.l.bf16 %v1834_v35 }
 0xb4a   :  { %v1839_v38 = vunpack.c.l.bf16 %v1835_v36 }
 0xb4b   :  { %v1842_v39 = vsub.f32 %v1830_v31, %v1838_v37 }
 0xb4c   :  { %v1843_v42 = vsub.f32 %v1831_v34, %v1839_v38 }
 0xb4d   :  { %v1846_v44 = vpack.c.bf16 %v1842_v39, %v1842_v39 }
 0xb4e   :  { %v1847_v43 = vpack.c.bf16 %v1843_v42, %v1843_v42 }
 0xb50   :  { %1934 = vmatprep.mubr.bf16.mxu1 %v1847_v43  ;;  %v2057_v43 = vsel %vm429_vm3, %v3733_v47, 0 }
 0xb51   :  { %1935 = vmatmul.mubr.bf16.vlgmr.msra.gmra.mrb[16].mxu1 %v1846_v44  ;;  %v3295_v44 = vld [vmem:[#allocation6 + $0xe0] ss:$8 sps:$4 sm:$0xff]  }
 0xb52   :  { %1943 = vmatpush1.bf16.xpose.msra.mxu1 %v3699_v59  ;;  %1974 = vmatprep.mubr.bf16.mxu1 %v3729_v41  ;;  %v3258_v41 = vld [vmem:[#allocation6 + $0x14] ss:$8 sps:$4 sm:$0xff]   ;;  %v3262_v59 = vld [vmem:[#allocation6 + $0x30] ss:$8 sps:$4 sm:$0xff]  }
 0xb53   :  { %1982 = vmatprep.subr.bf16.mxu1 %v3708_v61 }
 0xb5d   :  { %1975 = vmatmul.mubr.bf16.vlgmr.msra.gmra.mrb[16].mxu1 %v3727_v40  ;;  %v3261_v40 = vld [vmem:[#allocation6 + $0x24] ss:$8 sps:$4 sm:$0xff]  }
 0xb5e   :  { %1983 = vmatpush1.bf16.xpose.msra.mxu1 %v3733_v47  ;;  %2014 = vmatprep.mubr.bf16.mxu1 %v1835_v36  ;;  %v3297_v47 = vld [vmem:[#allocation6 + $0xe4] ss:$8 sps:$4 sm:$0xff]  }
 0xb5f   :  { %2657 = vmatprep.subr.bf16.mxu1 %v3255_v48 }
 0xb69   :  { %2015 = vmatmul.mubr.bf16.vlgmr.msra.gmra.mrb[16].mxu1 %v1834_v35 }
 0xb6a   :  { %2658 = vmatpush1.bf16.msra.mxu1 %v3253_v46  ;;  %v3298_v46 = vld [vmem:[#allocation6 + $0xf0] ss:$8 sps:$4 sm:$0xff]  }
 0xb6b   :  { %2659 = vmatprep.subr.bf16.mxu1 %v3258_v41 }
 0xb6e   :  { %2660 = vmatpush1.bf16.msra.mxu1 %v3256_v49 }
 0xb6f   :  { %2661 = vmatprep.subr.bf16.mxu1 %v3261_v40 }
 0xb72   :  { %2662 = vmatpush1.bf16.msra.mxu1 %v3259_v50 }
 0xb73   :  { %2663 = vmatprep.subr.bf16.mxu1 %v3264_v51 }
 0xb76   :  { %2664 = vmatpush1.bf16.msra.mxu1 %v3262_v59 }
 0xb77   :  { %2665 = vmatprep.subr.bf16.mxu1 %v3267_v55 }
 0xb7a   :  { %2666 = vmatpush1.bf16.msra.mxu1 %v3265_v56 }
 0xb7b   :  { %2667 = vmatprep.subr.bf16.mxu1 %v3270_v57 }
 0xb7e   :  { %2668 = vmatpush1.bf16.msra.mxu1 %v3268_v0 }
 0xb7f   :  { %2669 = vmatprep.subr.bf16.mxu1 %v3273_v1 }
 0xb82   :  { %2670 = vmatpush1.bf16.msra.mxu1 %v3271_v2  ;;  %v3301_v2 = vld [vmem:[#allocation6 + $0x100] ss:$8 sps:$4 sm:$0xff]  }
 0xb83   :  { %2671 = vmatprep.subr.bf16.mxu1 %v3276_v60 }
 0xb86   :  { %2672 = vmatpush1.bf16.msra.mxu1 %v3274_v4 }
 0xb87   :  { %2673 = vmatprep.subr.bf16.mxu1 %v3279_v5  ;;  %v3306_v5 = vld [vmem:[#allocation6 + $0x114] ss:$8 sps:$4 sm:$0xff]  }
 0xb8a   :  { %2674 = vmatpush1.bf16.msra.mxu1 %v3277_v7 }
 0xb8b   :  { %2675 = vmatprep.subr.bf16.mxu1 %v3282_v8 }
 0xb8e   :  { %2676 = vmatpush1.bf16.msra.mxu1 %v3280_v52 }
 0xb8f   :  { %2677 = vmatprep.subr.bf16.mxu1 %v3285_v63  ;;  %v3304_v63 = vld [vmem:[#allocation6 + $0x110] ss:$8 sps:$4 sm:$0xff]  }
 0xb92   :  { %2678 = vmatpush1.bf16.msra.mxu1 %v3283_v10  ;;  %v3309_v10 = vld [vmem:[#allocation6 + $0x124] ss:$8 sps:$4 sm:$0xff]  }
 0xb93   :  { %2679 = vmatprep.subr.bf16.mxu1 %v3288_v13 }
 0xb96   :  { %2680 = vmatpush1.bf16.msra.mxu1 %v3286_v14  ;;  %v3307_v14 = vld [vmem:[#allocation6 + $0x120] ss:$8 sps:$4 sm:$0xff]  }
 0xb97   :  { %2681 = vmatprep.subr.bf16.mxu1 %v3291_v15 }
 0xb9a   :  { %2682 = vmatpush1.bf16.msra.mxu1 %v3289_v17  ;;  %v3312_v17 = vld [vmem:[#allocation6 + $0x134] ss:$8 sps:$4 sm:$0xff]  }
 0xb9b   :  { %2683 = vmatprep.subr.bf16.mxu1 %v3294_v16  ;;  %v3310_v16 = vld [vmem:[#allocation6 + $0x130] ss:$8 sps:$4 sm:$0xff]  }
 0xb9e   :  { %2684 = vmatpush1.bf16.msra.mxu1 %v3292_v18  ;;  %v3315_v18 = vld [vmem:[#allocation6 + $0x144] ss:$8 sps:$4 sm:$0xff]  }
 0xb9f   :  { %2685 = vmatprep.subr.bf16.mxu1 %v3297_v47  ;;  %v3346_v47 = vld [vmem:[#allocation6 + $0x1f0] ss:$8 sps:$4 sm:$0xff]  }
 0xba2   :  { %2686 = vmatpush1.bf16.msra.mxu1 %v3295_v44 }
 0xc3c   :  { %v2016_v19 = vpop.f32.mrb[16].mxu1 }
 0xc3d   :  { %v2022_v22 = vmul.f32 0.0023584906, %v2016_v19  ;;  %v2018_v9 = vpop.f32.mrb[17].mxu1  ;;  %v3313_v19 = vld [vmem:[#allocation6 + $0x140] ss:$8 sps:$4 sm:$0xff]  }
 0xc3e   :  { %v2019_v23 = vpop.f32.mrb[18].mxu1  ;;  %v3321_v9 = vld [vmem:[#allocation6 + $0x164] ss:$8 sps:$4 sm:$0xff]  }
 0xc3f   :  { %v2023_v24 = vmul.f32 %v2022_v22, %v2022_v22  ;;  %v2020_v25 = vpop.f32.mrb[19].mxu1  ;;  %v3319_v23 = vld [vmem:[#allocation6 + $0x160] ss:$8 sps:$4 sm:$0xff]  }
 0xc40   :  { %v3322_v25 = vld [vmem:[#allocation6 + $0x170] ss:$8 sps:$4 sm:$0xff]  }
 0xc41   :  { %v2025_v26 = vrot.slane %v2023_v24, 7  ;;  %v3324_v24 = vld [vmem:[#allocation6 + $0x174] ss:$8 sps:$4 sm:$0xff]  }
 0xc43   :  { %v2027_v32 = vsub.f32 %v2022_v22, %v2025_v26  ;;  %v3327_v26 = vld [vmem:[#allocation6 + $0x184] ss:$8 sps:$4 sm:$0xff]  }
 0xc45   :  { %v2028_v21 = vmax.f32 %v2027_v32, 0.0  ;;  %v3325_v32 = vld [vmem:[#allocation6 + $0x180] ss:$8 sps:$4 sm:$0xff]  }
 0xc47   :  { %v2029_v27 = vadd.f32 1e-05, %v2028_v21  ;;  %v3330_v21 = vld [vmem:[#allocation6 + $0x194] ss:$8 sps:$4 sm:$0xff]  }
 0xc49   :  { %3355 = vrsqrt.f32 %v2029_v27  ;;  %v3328_v27 = vld [vmem:[#allocation6 + $0x190] ss:$8 sps:$4 sm:$0xff]  }
 0xc53   :  { %v3356_v28 = vpop.eup %3355 }
 0xc54   :  { %v2032_v29 = vmul.f32 %v3356_v28, %v2031_v33  ;;  %v3333_v33 = vld [vmem:[#allocation6 + $0x1a4] ss:$8 sps:$4 sm:$0xff]   ;;  %v3331_v28 = vld [vmem:[#allocation6 + $0x1a0] ss:$8 sps:$4 sm:$0xff]  }
 0xc56   :  { %v2035_v20 = vrot.slane %v2032_v29, 1  ;;  %v3336_v29 = vld [vmem:[#allocation6 + $0x1b4] ss:$8 sps:$4 sm:$0xff]  }
 0xc58   :  { %v2037_v31 = vmul.f32 %v2035_v20, %v2022_v22  ;;  %v3316_v22 = vld [vmem:[#allocation6 + $0x150] ss:$8 sps:$4 sm:$0xff]  }
 0xc5a   :  { %v2038_v34 = vsub.f32 %v2033_v30, %v2037_v31  ;;  %v3339_v30 = vld [vmem:[#allocation6 + $0x1c4] ss:$8 sps:$4 sm:$0xff]   ;;  %v3337_v31 = vld [vmem:[#allocation6 + $0x1c0] ss:$8 sps:$4 sm:$0xff]  }
 0xc5c   :  { %v2040_v35 = vrot.slane %v2038_v34, 7  ;;  %v3342_v34 = vld [vmem:[#allocation6 + $0x1d4] ss:$8 sps:$4 sm:$0xff]  }
 0xc5e   :  { %v2042_v36 = vsel %vm315_vm2, %v2035_v20, %v2040_v35  ;;  %v3334_v20 = vld [vmem:[#allocation6 + $0x1b0] ss:$8 sps:$4 sm:$0xff]  }
 0xc5f   :  { %v2043_v37 = vpack.c.bf16 %v2042_v36, %v2042_v36  ;;  %v3340_v35 = vld [vmem:[#allocation6 + $0x1d0] ss:$8 sps:$4 sm:$0xff]  }
 0xc61   :  { %v2044_v38 = vunpack.c.l.bf16 %v2043_v37 }
 0xc63   :  { %v2045_v39 = vsub.f32 %v2042_v36, %v2044_v38  ;;  %v3343_v38 = vld [vmem:[#allocation6 + $0x1e0] ss:$8 sps:$4 sm:$0xff]  }
 0xc65   :  { %v2046_v42 = vpack.c.bf16 %v2045_v39, %v2045_v39 }
 0xc67   :  { %2861 = vmatmul.mubr.msk.bf16.vlgmr.msra.gmra.mrb[32].mxu0 %vm151_vm1, %v2046_v42 }
 0xc68   :  { %2104 = vmatpush1.bf16.msra.mxu0 %v2057_v43  ;;  %2135 = vmatprep.mubr.bf16.mxu0 %v3469_v3 }
 0xc69   :  { %2864 = vmatprep.subr.msk.bf16.mxu0 %vm429_vm3, %v3697_v58  ;;  %v3300_v58 = vld [vmem:[#allocation6 + $0xf4] ss:$8 sps:$4 sm:$0xff]  }
 0xc6a   :  { %2687 = vmatprep.subr.bf16.mxu1 %v3300_v58 }
 0xc6b   :  { %2688 = vmatpush1.bf16.msra.mxu1 %v3298_v46 }
 0xc6f   :  { %2863 = vmatmul.mubr.msk.bf16.vlgmr.msra.gmra.mrb[36].mxu0 %vm151_vm1, %v2046_v42  ;;  %v3348_v42 = vld [vmem:[#allocation6 + $0x1f4] ss:$8 sps:$4 sm:$0xff]  }
 0xc70   :  { %2148 = vmatpush1.bf16.msra.mxu0 %v3760_v45  ;;  %2179 = vmatprep.mubr.bf16.mxu0 %v3469_v3  ;;  %v3303_v45 = vld [vmem:[#allocation6 + $0x104] ss:$8 sps:$4 sm:$0xff]  }
 0xc71   :  { %2866 = vmatprep.subr.msk.bf16.mxu0 %vm429_vm3, %v3708_v61  ;;  %2698 = vmatprep.subr.bf16.mxu1 %v3303_v45 }
 0xc77   :  { %2865 = vmatmul.mubr.msk.bf16.vlgmr.msra.gmra.mrb[32].mxu0 %vm151_vm1, %v2043_v37 }
 0xc78   :  { %2189 = vmatpush1.bf16.msra.mxu0 %v2057_v43  ;;  %2220 = vmatprep.mubr.bf16.mxu0 %v3469_v3 }
 0xc7f   :  { %2867 = vmatmul.mubr.msk.bf16.vlgmr.msra.gmra.mrb[36].mxu0 %vm151_vm1, %v2043_v37  ;;  %v3345_v37 = vld [vmem:[#allocation6 + $0x1e4] ss:$8 sps:$4 sm:$0xff]  }
 0xd4a   :  { %v2181_v48 = vpop.f32.mrb[32].mxu0 }
 0xd4b   :  { %v2232_v61 = vrot.slane %v2181_v48, %v3615_v53  ;;  %v2183_v41 = vpop.f32.mrb[33].mxu0  ;;  %v2252_v50 = vrot.slane %v2181_v48, %v3618_v54 }
 0xd4c   :  { %v2236_v49 = vrot.slane %v2183_v41, %v3615_v53  ;;  %v2185_v40 = vpop.f32.mrb[34].mxu0  ;;  %v2256_v55 = vrot.slane %v2183_v41, %v3618_v54 }
 0xd4d   :  { %v2245_v3 = vmul.f32 %v2232_v61, %v3713_v11  ;;  %v2186_v51 = vpop.f32.mrb[35].mxu0 }
 0xd4e   :  { %v2246_v59 = vmul.f32 %v2236_v49, %v3715_v12 }
 0xd4f   :  { %v2265_v56 = vadd.f32 %v2252_v50, %v2245_v3 }
 0xd50   :  { %v2266_v57 = vadd.f32 %v2256_v55, %v2246_v59 }
 0xd51   :  { %v2333_v60 = vpack.c.bf16 %v2265_v56, %v2265_v56 }
 0xd52   :  { %v3786_v0 = vpop.f32.mrb[36].mxu0  ;;  %v2334_v1 = vpack.c.bf16 %v2266_v57, %v2266_v57 }
 0xd53   :  { %v2224_v4 = vpop.f32.mrb[37].mxu0  ;;  %v2240_v36 = vrot.slane %v3786_v0, %v3615_v53  ;;  %v2260_v43 = vrot.slane %v3786_v0, %v3618_v54 }
 0xd54   :  { %v2244_v7 = vrot.slane %v2224_v4, %v3615_v53  ;;  %v2226_v8 = vpop.f32.mrb[38].mxu0  ;;  %2689 = vmatprep.mubr.bf16.mxu1 %v2334_v1  ;;  %v2264_v12 = vrot.slane %v2224_v4, %v3618_v54 }
 0xd55   :  { %v2227_v11 = vpop.f32.mrb[39].mxu0  ;;  %2690 = vmatmul.mubr.bf16.vlgmr.msra.gmra.mrb[20].mxu1 %v2333_v60  ;;  %v2247_v39 = vmul.f32 %v2240_v36, %v3739_v6 }
 0xd56   :  { %v2248_v52 = vmul.f32 %v2244_v7, %v3741_v62  ;;  %2699 = vmatpush1.bf16.msra.mxu1 %v3301_v2  ;;  %v3318_v62 = vld [vmem:[#allocation6 + $0x154] ss:$8 sps:$4 sm:$0xff]  }
 0xd57   :  { %2700 = vmatprep.subr.bf16.mxu1 %v3306_v5  ;;  %v2267_v44 = vadd.f32 %v2260_v43, %v2247_v39 }
 0xd58   :  { %v2268_v13 = vadd.f32 %v2264_v12, %v2248_v52 }
 0xd59   :  { %v2335_v58 = vpack.c.bf16 %v2267_v44, %v2267_v44 }
 0xd5a   :  { %2701 = vmatpush1.bf16.msra.mxu1 %v3304_v63  ;;  %v2336_v15 = vpack.c.bf16 %v2268_v13, %v2268_v13 }
 0xd5b   :  { %2702 = vmatprep.subr.bf16.mxu1 %v3309_v10 }
 0xd5c   :  { %2730 = vmatprep.mubr.bf16.mxu1 %v2336_v15 }
 0xd5e   :  { %2703 = vmatpush1.bf16.msra.mxu1 %v3307_v14 }
 0xd5f   :  { %2704 = vmatprep.subr.bf16.mxu1 %v3312_v17 }
 0xd62   :  { %2705 = vmatpush1.bf16.msra.mxu1 %v3310_v16 }
 0xd63   :  { %2706 = vmatprep.subr.bf16.mxu1 %v3315_v18 }
 0xd66   :  { %2707 = vmatpush1.bf16.msra.mxu1 %v3313_v19 }
 0xd67   :  { %2708 = vmatprep.subr.bf16.mxu1 %v3318_v62 }
 0xd6a   :  { %2709 = vmatpush1.bf16.msra.mxu1 %v3316_v22 }
 0xd6b   :  { %2710 = vmatprep.subr.bf16.mxu1 %v3321_v9 }
 0xd6e   :  { %2711 = vmatpush1.bf16.msra.mxu1 %v3319_v23 }
 0xd6f   :  { %2712 = vmatprep.subr.bf16.mxu1 %v3324_v24 }
 0xd72   :  { %2713 = vmatpush1.bf16.msra.mxu1 %v3322_v25 }
 0xd73   :  { %2714 = vmatprep.subr.bf16.mxu1 %v3327_v26 }
 0xd76   :  { %2715 = vmatpush1.bf16.msra.mxu1 %v3325_v32 }
 0xd77   :  { %2716 = vmatprep.subr.bf16.mxu1 %v3330_v21 }
 0xd7a   :  { %2717 = vmatpush1.bf16.msra.mxu1 %v3328_v27 }
 0xd7b   :  { %2718 = vmatprep.subr.bf16.mxu1 %v3333_v33 }
 0xd7e   :  { %2719 = vmatpush1.bf16.msra.mxu1 %v3331_v28 }
 0xd7f   :  { %2720 = vmatprep.subr.bf16.mxu1 %v3336_v29 }
 0xd82   :  { %2721 = vmatpush1.bf16.msra.mxu1 %v3334_v20 }
 0xd83   :  { %2722 = vmatprep.subr.bf16.mxu1 %v3339_v30 }
 0xd86   :  { %2723 = vmatpush1.bf16.msra.mxu1 %v3337_v31 }
 0xd87   :  { %2724 = vmatprep.subr.bf16.mxu1 %v3342_v34 }
 0xd8a   :  { %2725 = vmatpush1.bf16.msra.mxu1 %v3340_v35 }
 0xd8b   :  { %2726 = vmatprep.subr.bf16.mxu1 %v3345_v37 }
 0xd8e   :  { %2727 = vmatpush1.bf16.msra.mxu1 %v3343_v38 }
 0xd8f   :  { %2728 = vmatprep.subr.bf16.mxu1 %v3348_v42 }
 0xd92   :  { %2729 = vmatpush1.bf16.msra.mxu1 %v3346_v47 }
 0xd95   :  { %2731 = vmatmul.mubr.bf16.vlgmr.msra.gmra.mrb[20].mxu1 %v2335_v58 }
 0xe68   :  { %v2732_v46 = vpop.f32.mrb[20].mxu1 }
 0xe69   :  { %v2739_v53 = vmul.f32 0.5, %v2732_v46  ;;  %v2734_v45 = vpop.f32.mrb[21].mxu1 }
 0xe6a   :  { %v2740_v48 = vmul.f32 0.5, %v2734_v45  ;;  %v2736_v61 = vpop.f32.mrb[22].mxu1 }
 0xe6b   :  { %3357 = vtanh.f32 %v2739_v53  ;;  %v2737_v41 = vpop.f32.mrb[23].mxu1 }
 0xe6c   :  { %3359 = vtanh.f32 %v2740_v48 }
 0xe75   :  { %v3358_v6 = vpop.eup %3357 }
 0xe76   :  { %v3360_v49 = vpop.eup %3359  ;;  %v2743_v40 = vadd.f32 1.0, %v3358_v6 }
 0xe77   :  { %v2744_v3 = vadd.f32 1.0, %v3360_v49 }
 0xe78   :  { %v2745_v54 = vmul.f32 0.5, %v2743_v40 }
 0xe79   :  { %v2746_v50 = vmul.f32 0.5, %v2744_v3 }
 0xe7a   :  { %2747 = vst [vmem:[%s3808_s6] sm:$0xff] %v2745_v54 }
 0xe7b   :  { %2748 = vst [vmem:[%s3808_s6 + $0x8] sm:$0xff] %v2746_v50 }
 0xe7c   :  { %2753 = vsyncpa [#allocation3], 1 }
 0xe7d   :  { %2754 = vsyncpa [#allocation5], 1 }
 0xe7e   :  { %2755 = vsyncpa [#allocation8], 1 }

</bundles_post_ra>
